<compile_context>
chip_gen: v7x
topology: tpu7x:2x2x1
jax: 0.10.0
libtpu: 0.0.40
codegen_flags: <defaults>
</compile_context>

<pallas_src>
import math
import jax
import jax.numpy as jnp
from jax.experimental import pallas as pl
from jax.experimental.pallas import tpu as pltpu


def round_up(x, m):
    return (x + m - 1) // m * m


def iqn_kernel(obs_ref, taus_ref, pis_ref,
               wh_ref, bh_ref, wc_ref, bc_ref,
               w1_ref, b1_ref, w2_ref, b2_ref, out_ref):
    f32, bf16 = jnp.float32, jnp.bfloat16
    Bt = obs_ref.shape[0]                 # batch rows in this block
    T = taus_ref.shape[1]                 # num_tau (lane axis of taus block)
    CP = pis_ref.shape[1]                 # padded n_cos (lane-dense)
    W = wh_ref.shape[1]                   # padded width (lane-dense)

    # head: x = relu(obs @ Wh + bh)                              -> (Bt, W)
    x = jnp.maximum(
        jnp.dot(obs_ref[...].astype(bf16), wh_ref[...],
                preferred_element_type=f32) + bh_ref[...], 0.0)

    # cosine features cos(tau * pi*i), built lane-dense          -> (Bt*T, CP)
    # (padded pis lanes are 0 -> cos = 1, but the matching wc rows are 0,
    #  so nothing leaks into the embedding)
    cos_in = jnp.cos(
        taus_ref[...][:, :, None] * pis_ref[...].reshape(1, 1, CP)
    ).reshape(Bt * T, CP)

    # cos embedding: relu(cos @ Wc + bc)                         -> (Bt*T, W)
    cos_x = jnp.maximum(
        jnp.dot(cos_in.astype(bf16), wc_ref[...],
                preferred_element_type=f32) + bc_ref[...], 0.0)

    # gate: broadcast x over the tau axis (no one-hot matmul); cast straight
    # to bf16 -- its only consumer is the MXU                    -> (Bt*T, W)
    z = (x[:, None, :] * cos_x.reshape(Bt, T, W)).reshape(Bt * T, W)
    z = z.astype(bf16)

    # MLP hidden layer (Linear + ReLU)                           -> (Bt*T, W)
    h = jnp.maximum(
        jnp.dot(z, w1_ref[...], preferred_element_type=f32) + b1_ref[...],
        0.0)

    # exact tau reduction BEFORE the output layer (mean is linear); the 1/T
    # factor is already folded into w2 by prepare_params         -> (Bt, W)
    h_sum = jnp.sum(h.reshape(Bt, T, W), axis=1)

    # output layer -> per-batch actions                          -> (Bt, A)
    out_ref[...] = jnp.dot(h_sum.astype(bf16), w2_ref[...],
                           preferred_element_type=f32) + b2_ref[...]


def prepare_params(params, num_tau):
    """Pad feature dims to lane-dense multiples of 128, cast weights to bf16
    (f32 biases), and fold the 1/num_tau tau-mean factor into w2.  Zero
    padding keeps the result exact.  Call ONCE, off the hot path."""
    W = params["wh"].shape[1]
    n_cos = params["wc"].shape[0]
    A = params["w2"].shape[1]
    WP = round_up(W, 128)
    CP = round_up(n_cos, 128)
    AP = round_up(A, 128)

    def pad2(a, rows, cols, dtype):
        out = jnp.zeros((rows, cols), dtype)
        return out.at[:a.shape[0], :a.shape[1]].set(a.astype(dtype))

    return {
        "wh": pad2(params["wh"], params["wh"].shape[0], WP, jnp.bfloat16),
        "bh": pad2(params["bh"], 1, WP, jnp.float32),
        "wc": pad2(params["wc"], CP, WP, jnp.bfloat16),
        "bc": pad2(params["bc"], 1, WP, jnp.float32),
        "w1": pad2(params["w1"], WP, WP, jnp.bfloat16),
        "b1": pad2(params["b1"], 1, WP, jnp.float32),
        # tau-mean folded in: (sum_t h_t) @ (w2 / T) + b2 == mean_t(h_t @ w2 + b2)
        "w2": pad2(params["w2"] * (1.0 / float(num_tau)), WP, AP, jnp.bfloat16),
        "b2": pad2(params["b2"], 1, AP, jnp.float32),
        "pis": pad2(params["pis"], 1, CP, jnp.float32),
        "dims": (W, n_cos, A),
        "num_tau": num_tau,
    }


def iqn_forward(obs, taus, pp, num_tau, *, block_b=256):
    """obs: (B, obs_size) f32; taus: (B, num_tau, 1) f32 in [0,1);
    pp: output of prepare_params (must have been built with the same
    num_tau). Returns actions (B, act_size) f32."""
    assert pp["num_tau"] == num_tau
    B, obs_size = obs.shape
    T = num_tau
    W, n_cos, A = pp["dims"]
    WP = pp["wh"].shape[1]
    CP = pp["pis"].shape[1]
    AP = pp["w2"].shape[1]

    # --- batch tiling -----------------------------------------------------
    Bmin = round_up(B, 8)
    block_b = max(8, min(round_up(block_b, 8), Bmin))
    # give the "parallel" batch axis >= 2 grid steps whenever the padded
    # batch allows it, so v7x's two TensorCores both get work
    if Bmin >= 16 and Bmin <= block_b:
        block_b = round_up(Bmin // 2, 8)
    Bpad = round_up(B, block_b)
    grid = (Bpad // block_b,)

    # taus lane-dense: (B, T) rows, batch-major / tau-minor (matches .view)
    taus2 = taus.reshape(B, T)
    if Bpad != B:
        # NOTE: for large training batches pick block_b dividing B so this
        # extra HBM pass is skipped entirely.
        obs = jnp.pad(obs, ((0, Bpad - B), (0, 0)))
        taus2 = jnp.pad(taus2, ((0, Bpad - B), (0, 0)))

    w_bytes = sum(int(pp[k].nbytes) for k in
                  ("pis", "wh", "bh", "wc", "bc", "w1", "b1", "w2", "b2"))
    cost = pl.CostEstimate(
        flops=int(2 * Bpad * (obs_size * WP + T * CP * WP + T * WP * WP
                              + WP * AP)),
        transcendentals=int(Bpad * T * CP),
        bytes_accessed=int(obs.nbytes) + int(taus2.nbytes)
                       + int(Bpad * AP * 4) + w_bytes,
    )

    # resident weights: constant index_map -> no re-DMA across grid steps
    res = lambda shape: pl.BlockSpec(shape, lambda i: (0, 0))

    out = pl.pallas_call(
        iqn_kernel,
        out_shape=jax.ShapeDtypeStruct((Bpad, AP), jnp.float32),
        grid=grid,
        in_specs=[
            pl.BlockSpec((block_b, obs_size), lambda i: (i, 0)),   # obs
            pl.BlockSpec((block_b, T), lambda i: (i, 0)),          # taus
            res((1, CP)),                                          # pis
            res((obs_size, WP)), res((1, WP)),                     # head
            res((CP, WP)), res((1, WP)),                           # cos emb
            res((WP, WP)), res((1, WP)),                           # mlp in
            res((WP, AP)), res((1, AP)),                           # mlp out
        ],
        out_specs=pl.BlockSpec((block_b, AP), lambda i: (i, 0)),
        compiler_params=pltpu.CompilerParams(
            dimension_semantics=("parallel",),
            vmem_limit_bytes=48 * 1024 * 1024),
        cost_estimate=cost,
    )(obs, taus2, pp["pis"],
      pp["wh"], pp["bh"], pp["wc"], pp["bc"],
      pp["w1"], pp["b1"], pp["w2"], pp["b2"])

    # padded batch rows carry garbage once biases are nonzero -> keep slice
    return out[:B, :A]


def make_params(key, obs_size, act_size, width, n_cos):
    """Deterministic Kaiming-normal (fan_in, relu) init, zero biases (f32)."""
    ks = jax.random.split(key, 4)

    def kaiming(k, fan_in, fan_out):
        std = math.sqrt(2.0 / fan_in)
        # stored already transposed: (in, out), so kernels do x @ W
        return jax.random.normal(k, (fan_in, fan_out), jnp.float32) * std

    return {
        "wh": kaiming(ks[0], obs_size, width),            # head
        "bh": jnp.zeros((1, width), jnp.float32),
        "wc": kaiming(ks[1], n_cos, width),               # cos_embedding
        "bc": jnp.zeros((1, width), jnp.float32),
        "w1": kaiming(ks[2], width, width),               # MLP in_to_hidden
        "b1": jnp.zeros((1, width), jnp.float32),
        "w2": kaiming(ks[3], width, act_size),            # MLP hidden_to_out
        "b2": jnp.zeros((1, act_size), jnp.float32),
        "pis": jnp.array([[math.pi * i for i in range(1, n_cos + 1)]],
                         jnp.float32),                    # (1, n_cos)
    }


def ref_forward(obs, taus, params, num_tau):
    """Pure-JAX f32 reference mirroring IQNNet.forward / get_quantiles."""
    B = obs.shape[0]
    T = num_tau
    W = params["wh"].shape[1]
    A = params["w2"].shape[1]
    x = jax.nn.relu(obs @ params["wh"] + params["bh"][0])             # (B, W)
    cos = jnp.cos(taus * params["pis"][0])                            # (B,T,C)
    cos_x = jax.nn.relu(cos.reshape(B * T, -1) @ params["wc"]
                        + params["bc"][0]).reshape(B, T, W)
    z = (x[:, None, :] * cos_x).reshape(B * T, W)
    h = jax.nn.relu(z @ params["w1"] + params["b1"][0])
    q = (h @ params["w2"] + params["b2"][0]).reshape(B, T, A)
    return q.mean(axis=1)


if __name__ == "__main__":
    # Small, module-consistent shapes.
    B = 2          # batch
    obs_size = 16  # IQNNet in_size
    act_size = 4   # IQNNet action_size
    num_tau = 8    # num_policy_samples (quantile count used in forward)
    width = 64     # net_kwargs['width'] -> head width == MLP width
    n_cos = 64     # fixed in IQNNet

    key = jax.random.PRNGKey(0)
    k_param, k_obs, k_tau = jax.random.split(key, 3)

    params = make_params(k_param, obs_size, act_size, width, n_cos)
    padded = prepare_params(params, num_tau)   # pad + bf16 + 1/T fold, ONCE

    obs = jax.random.normal(k_obs, (B, obs_size), jnp.float32)
    # taus ~ U[0,1), shape (B, num_tau, 1)  (torch.rand(batch, num_tau, 1))
    taus = jax.random.uniform(k_tau, (B, num_tau, 1), jnp.float32)

    actions = iqn_forward(obs, taus, padded, num_tau)
    actions = jax.block_until_ready(actions)

    expected = ref_forward(obs, taus, params, num_tau)
    assert actions.shape == (B, act_size)
    # Relative-error check scaled to the output magnitude (bf16 MXU operands
    # with f32 accumulation; tau-mean reordering is exact by linearity).
    max_abs = float(jnp.max(jnp.abs(expected)))
    max_err = float(jnp.max(jnp.abs(actions - expected)))
    tol = 5e-2 * max(1.0, max_abs)
    assert max_err <= tol, (
        f"Pallas kernel output mismatch vs reference: max abs diff {max_err} "
        f"(tol {tol})")

    print("KERNEL_OK")
</pallas_src>

<mosaic_0001>
module attributes {stable_mosaic.version = 11 : i64} {
  func.func @iqn_kernel(%arg0: i32, %arg1: memref<8x16xf32, #tpu.memory_space<vmem>>, %arg2: memref<8x8xf32, #tpu.memory_space<vmem>>, %arg3: memref<1x128xf32, #tpu.memory_space<vmem>>, %arg4: memref<16x128xbf16, #tpu.memory_space<vmem>>, %arg5: memref<1x128xf32, #tpu.memory_space<vmem>>, %arg6: memref<128x128xbf16, #tpu.memory_space<vmem>>, %arg7: memref<1x128xf32, #tpu.memory_space<vmem>>, %arg8: memref<128x128xbf16, #tpu.memory_space<vmem>>, %arg9: memref<1x128xf32, #tpu.memory_space<vmem>>, %arg10: memref<128x128xbf16, #tpu.memory_space<vmem>>, %arg11: memref<1x128xf32, #tpu.memory_space<vmem>>, %arg12: memref<8x128xf32, #tpu.memory_space<vmem>>) attributes {dimension_semantics = [#tpu.dimension_semantics<parallel>], iteration_bounds = array<i64: 1>, scalar_prefetch = 0 : i64, scratch_operands = 0 : i64, tpu.core_type = #tpu.core_type<tc>, window_params = [{transform_indices = @transform_0, window_bounds = array<i64: 8, 16>}, {transform_indices = @transform_1, window_bounds = array<i64: 8, 8>}, {pipeline_mode = #tpu.pipeline_mode<synchronous>, transform_indices = @transform_2, window_bounds = array<i64: 1, 128>}, {pipeline_mode = #tpu.pipeline_mode<synchronous>, transform_indices = @transform_3, window_bounds = array<i64: 16, 128>}, {pipeline_mode = #tpu.pipeline_mode<synchronous>, transform_indices = @transform_4, window_bounds = array<i64: 1, 128>}, {pipeline_mode = #tpu.pipeline_mode<synchronous>, transform_indices = @transform_5, window_bounds = array<i64: 128, 128>}, {pipeline_mode = #tpu.pipeline_mode<synchronous>, transform_indices = @transform_6, window_bounds = array<i64: 1, 128>}, {pipeline_mode = #tpu.pipeline_mode<synchronous>, transform_indices = @transform_7, window_bounds = array<i64: 128, 128>}, {pipeline_mode = #tpu.pipeline_mode<synchronous>, transform_indices = @transform_8, window_bounds = array<i64: 1, 128>}, {pipeline_mode = #tpu.pipeline_mode<synchronous>, transform_indices = @transform_9, window_bounds = array<i64: 128, 128>}, {pipeline_mode = #tpu.pipeline_mode<synchronous>, transform_indices = @transform_10, window_bounds = array<i64: 1, 128>}, {transform_indices = @transform_11, window_bounds = array<i64: 8, 128>}]} {
    %c0 = arith.constant 0 : index
    %c0_0 = arith.constant 0 : index
    %0 = vector.load %arg1[%c0, %c0_0] : memref<8x16xf32, #tpu.memory_space<vmem>>, vector<8x16xf32>
    %1 = arith.truncf %0 : vector<8x16xf32> to vector<8x16xbf16>
    %c0_1 = arith.constant 0 : index
    %c0_2 = arith.constant 0 : index
    %2 = vector.load %arg4[%c0_1, %c0_2] : memref<16x128xbf16, #tpu.memory_space<vmem>>, vector<16x128xbf16>
    %cst = arith.constant dense<0.000000e+00> : vector<8x128xf32>
    %3 = tpu.matmul %1, %2, %cst {dimension_numbers = #tpu.dot_dimension_numbers<[1], [0], [0], [1], [0, 0, 1, 1], [], []>} : vector<8x16xbf16>, vector<16x128xbf16>, vector<8x128xf32> -> vector<8x128xf32>
    %c0_3 = arith.constant 0 : index
    %c0_4 = arith.constant 0 : index
    %4 = vector.load %arg5[%c0_3, %c0_4] : memref<1x128xf32, #tpu.memory_space<vmem>>, vector<1x128xf32>
    %5 = vector.broadcast %4 : vector<1x128xf32> to vector<8x128xf32>
    %6 = arith.addf %3, %5 : vector<8x128xf32>
    %cst_5 = arith.constant 0.000000e+00 : f32
    %7 = vector.broadcast %cst_5 : f32 to vector<8x128xf32>
    %8 = arith.maximumf %6, %7 : vector<8x128xf32>
    %c0_6 = arith.constant 0 : index
    %c0_7 = arith.constant 0 : index
    %9 = vector.load %arg2[%c0_6, %c0_7] : memref<8x8xf32, #tpu.memory_space<vmem>>, vector<8x8xf32>
    %10 = vector.shape_cast %9 : vector<8x8xf32> to vector<8x8x1xf32>
    %c0_8 = arith.constant 0 : index
    %c0_9 = arith.constant 0 : index
    %11 = vector.load %arg3[%c0_8, %c0_9] : memref<1x128xf32, #tpu.memory_space<vmem>>, vector<1x128xf32>
    %12 = vector.shape_cast %11 : vector<1x128xf32> to vector<1x1x128xf32>
    %13 = vector.broadcast %10 : vector<8x8x1xf32> to vector<8x8x128xf32>
    %14 = vector.broadcast %12 : vector<1x1x128xf32> to vector<8x8x128xf32>
    %15 = arith.mulf %13, %14 : vector<8x8x128xf32>
    %16 = math.cos %15 : vector<8x8x128xf32>
    %17 = vector.shape_cast %16 : vector<8x8x128xf32> to vector<64x128xf32>
    %18 = arith.truncf %17 : vector<64x128xf32> to vector<64x128xbf16>
    %c0_10 = arith.constant 0 : index
    %c0_11 = arith.constant 0 : index
    %19 = vector.load %arg6[%c0_10, %c0_11] : memref<128x128xbf16, #tpu.memory_space<vmem>>, vector<128x128xbf16>
    %cst_12 = arith.constant dense<0.000000e+00> : vector<64x128xf32>
    %20 = tpu.matmul %18, %19, %cst_12 {dimension_numbers = #tpu.dot_dimension_numbers<[1], [0], [0], [1], [0, 0, 1, 1], [], []>} : vector<64x128xbf16>, vector<128x128xbf16>, vector<64x128xf32> -> vector<64x128xf32>
    %c0_13 = arith.constant 0 : index
    %c0_14 = arith.constant 0 : index
    %21 = vector.load %arg7[%c0_13, %c0_14] : memref<1x128xf32, #tpu.memory_space<vmem>>, vector<1x128xf32>
    %22 = vector.broadcast %21 : vector<1x128xf32> to vector<64x128xf32>
    %23 = arith.addf %20, %22 : vector<64x128xf32>
    %cst_15 = arith.constant 0.000000e+00 : f32
    %24 = vector.broadcast %cst_15 : f32 to vector<64x128xf32>
    %25 = arith.maximumf %23, %24 : vector<64x128xf32>
    %26 = vector.shape_cast %8 : vector<8x128xf32> to vector<8x1x128xf32>
    %27 = vector.shape_cast %25 : vector<64x128xf32> to vector<8x8x128xf32>
    %28 = vector.broadcast %26 : vector<8x1x128xf32> to vector<8x8x128xf32>
    %29 = arith.mulf %28, %27 : vector<8x8x128xf32>
    %30 = vector.shape_cast %29 : vector<8x8x128xf32> to vector<64x128xf32>
    %31 = arith.truncf %30 : vector<64x128xf32> to vector<64x128xbf16>
    %c0_16 = arith.constant 0 : index
    %c0_17 = arith.constant 0 : index
    %32 = vector.load %arg8[%c0_16, %c0_17] : memref<128x128xbf16, #tpu.memory_space<vmem>>, vector<128x128xbf16>
    %cst_18 = arith.constant dense<0.000000e+00> : vector<64x128xf32>
    %33 = tpu.matmul %31, %32, %cst_18 {dimension_numbers = #tpu.dot_dimension_numbers<[1], [0], [0], [1], [0, 0, 1, 1], [], []>} : vector<64x128xbf16>, vector<128x128xbf16>, vector<64x128xf32> -> vector<64x128xf32>
    %c0_19 = arith.constant 0 : index
    %c0_20 = arith.constant 0 : index
    %34 = vector.load %arg9[%c0_19, %c0_20] : memref<1x128xf32, #tpu.memory_space<vmem>>, vector<1x128xf32>
    %35 = vector.broadcast %34 : vector<1x128xf32> to vector<64x128xf32>
    %36 = arith.addf %33, %35 : vector<64x128xf32>
    %cst_21 = arith.constant 0.000000e+00 : f32
    %37 = vector.broadcast %cst_21 : f32 to vector<64x128xf32>
    %38 = arith.maximumf %36, %37 : vector<64x128xf32>
    %39 = vector.shape_cast %38 : vector<64x128xf32> to vector<8x8x128xf32>
    %cst_22 = arith.constant dense<0.000000e+00> : vector<8x128xf32>
    %40 = vector.multi_reduction <add>, %39, %cst_22 [1] : vector<8x8x128xf32> to vector<8x128xf32>
    %41 = arith.truncf %40 : vector<8x128xf32> to vector<8x128xbf16>
    %c0_23 = arith.constant 0 : index
    %c0_24 = arith.constant 0 : index
    %42 = vector.load %arg10[%c0_23, %c0_24] : memref<128x128xbf16, #tpu.memory_space<vmem>>, vector<128x128xbf16>
    %cst_25 = arith.constant dense<0.000000e+00> : vector<8x128xf32>
    %43 = tpu.matmul %41, %42, %cst_25 {dimension_numbers = #tpu.dot_dimension_numbers<[1], [0], [0], [1], [0, 0, 1, 1], [], []>} : vector<8x128xbf16>, vector<128x128xbf16>, vector<8x128xf32> -> vector<8x128xf32>
    %c0_26 = arith.constant 0 : index
    %c0_27 = arith.constant 0 : index
    %44 = vector.load %arg11[%c0_26, %c0_27] : memref<1x128xf32, #tpu.memory_space<vmem>>, vector<1x128xf32>
    %45 = vector.broadcast %44 : vector<1x128xf32> to vector<8x128xf32>
    %46 = arith.addf %43, %45 : vector<8x128xf32>
    %c0_28 = arith.constant 0 : index
    %c0_29 = arith.constant 0 : index
    %47 = vector.load %arg12[%c0_28, %c0_29] : memref<8x128xf32, #tpu.memory_space<vmem>>, vector<8x128xf32>
    tpu.vector_store %arg12[%c0_28, %c0_29], %46 {strides = array<i32>} : memref<8x128xf32, #tpu.memory_space<vmem>>, vector<8x128xf32>,
    return
  }
  func.func @transform_0(%arg0: i32) -> (i32, i32) {
    %c0_i32 = arith.constant 0 : i32
    %c0_i32_0 = arith.constant 0 : i32
    return %arg0, %c0_i32 : i32, i32
  }
  func.func @transform_1(%arg0: i32) -> (i32, i32) {
    %c0_i32 = arith.constant 0 : i32
    %c0_i32_0 = arith.constant 0 : i32
    return %arg0, %c0_i32 : i32, i32
  }
  func.func @transform_2(%arg0: i32) -> (i32, i32) {
    %c0_i32 = arith.constant 0 : i32
    %c0_i32_0 = arith.constant 0 : i32
    %c0_i32_1 = arith.constant 0 : i32
    return %c0_i32, %c0_i32_0 : i32, i32
  }
  func.func @transform_3(%arg0: i32) -> (i32, i32) {
    %c0_i32 = arith.constant 0 : i32
    %c0_i32_0 = arith.constant 0 : i32
    %c0_i32_1 = arith.constant 0 : i32
    return %c0_i32, %c0_i32_0 : i32, i32
  }
  func.func @transform_4(%arg0: i32) -> (i32, i32) {
    %c0_i32 = arith.constant 0 : i32
    %c0_i32_0 = arith.constant 0 : i32
    %c0_i32_1 = arith.constant 0 : i32
    return %c0_i32, %c0_i32_0 : i32, i32
  }
  func.func @transform_5(%arg0: i32) -> (i32, i32) {
    %c0_i32 = arith.constant 0 : i32
    %c0_i32_0 = arith.constant 0 : i32
    %c0_i32_1 = arith.constant 0 : i32
    return %c0_i32, %c0_i32_0 : i32, i32
  }
  func.func @transform_6(%arg0: i32) -> (i32, i32) {
    %c0_i32 = arith.constant 0 : i32
    %c0_i32_0 = arith.constant 0 : i32
    %c0_i32_1 = arith.constant 0 : i32
    return %c0_i32, %c0_i32_0 : i32, i32
  }
  func.func @transform_7(%arg0: i32) -> (i32, i32) {
    %c0_i32 = arith.constant 0 : i32
    %c0_i32_0 = arith.constant 0 : i32
    %c0_i32_1 = arith.constant 0 : i32
    return %c0_i32, %c0_i32_0 : i32, i32
  }
  func.func @transform_8(%arg0: i32) -> (i32, i32) {
    %c0_i32 = arith.constant 0 : i32
    %c0_i32_0 = arith.constant 0 : i32
    %c0_i32_1 = arith.constant 0 : i32
    return %c0_i32, %c0_i32_0 : i32, i32
  }
  func.func @transform_9(%arg0: i32) -> (i32, i32) {
    %c0_i32 = arith.constant 0 : i32
    %c0_i32_0 = arith.constant 0 : i32
    %c0_i32_1 = arith.constant 0 : i32
    return %c0_i32, %c0_i32_0 : i32, i32
  }
  func.func @transform_10(%arg0: i32) -> (i32, i32) {
    %c0_i32 = arith.constant 0 : i32
    %c0_i32_0 = arith.constant 0 : i32
    %c0_i32_1 = arith.constant 0 : i32
    return %c0_i32, %c0_i32_0 : i32, i32
  }
  func.func @transform_11(%arg0: i32) -> (i32, i32) {
    %c0_i32 = arith.constant 0 : i32
    %c0_i32_0 = arith.constant 0 : i32
    return %arg0, %c0_i32 : i32, i32
  }
}

</mosaic_0001>

<bundles_post_ra>
// kernel: tpu_custom_call.1
= control target key start
LH: loop header
LB: loop body
LE: loop exit
PB: predicated region body
PF: predicated region fallthrough
CT: control target
= control target key end

     0   :  { %16 = vsyncpa [#allocation3], 0  ;;  %s3187_s0 = inlined_call_operand.hbm [shape: f32[8,16], index: 0, kind: input, shape index: {}]   ;;  %s3188_s1 = inlined_call_operand.hbm [shape: f32[8,8], index: 1, kind: input, shape index: {}]   ;;  %s3189_s2 = inlined_call_operand.vmem [shape: f32[1,128], index: 2, kind: input, shape index: {}]   ;;  %s3190_s3 = inlined_call_operand.vmem [shape: bf16[16,128], index: 3, kind: input, shape index: {}]   ;;  %s3191_s4 = inlined_call_operand.vmem [shape: f32[1,128], index: 4, kind: input, shape index: {}]   ;;  %s3192_s5 = inlined_call_operand.hbm [shape: bf16[128,128], index: 5, kind: input, shape index: {}]   ;;  %s3193_s6 = inlined_call_operand.vmem [shape: f32[1,128], index: 6, kind: input, shape index: {}]   ;;  %s3194_s7 = inlined_call_operand.hbm [shape: bf16[128,128], index: 7, kind: input, shape index: {}]   ;;  %s3195_s8 = inlined_call_operand.vmem [shape: f32[1,128], index: 8, kind: input, shape index: {}]   ;;  %s3196_s9 = inlined_call_operand.hbm [shape: bf16[128,128], index: 9, kind: input, shape index: {}]   ;;  %s3197_s10 = inlined_call_operand.vmem [shape: f32[1,128], index: 10, kind: input, shape index: {}]   ;;  %s3198_s11 = inlined_call_operand.hbm [shape: f32[8,128], index: 11, kind: output, shape index: {}]  }
   0x1   :  { %17 = vsyncpa [#allocation6], 0 }
   0x2   :  { %18 = vsyncpa [#allocation9], 0 }
   0x3   :  { %19 = vsyncpa [#allocation4], 0  ;;  %s2091_s17 = smov [#allocation5]   ;;  %s1951_s21 = scalar_lea.hbm %s3188_s1, 128 }
   0x4   :  { %s36_s18 = sshll.u32 %s2091_s17, 4  ;;  %p1952_p0 = scmp.ne.s32.totalorder %s3188_s1, %s1951_s21  ;;  %s37_s18 = int_to_ptr.vmem [resolvable:$true] %s36_s18 }
   0x5   :  { %p1955_p1 = scmp.lt.u32.totalorder %s1951_s21, %s3188_s1 }
   0x7   :  { %p1957_p2 = pnand %p1955_p1, %p1952_p0 }
   0x9   :  { %1960 = shalt.err (!%p1957_p2)
}
   0xa   :  { %s1961_s26 = scalar_lea.vmem %s37_s18, 128  ;;  %p1966_p4 = scmp.lt.s32.totalorder %s37_s18, %s37_s18 }
   0xb   :  { %p1962_p3 = scmp.ne.s32.totalorder %s37_s18, %s1961_s26  ;;  %p1967_p5 = scmp.lt.s32.totalorder %s1961_s26, %s1961_s26 }
   0xd   :  { %p1968_p6 = por %p1967_p5, %p1966_p4 }
   0xf   :  { %p1969_p7 = pnand %p1968_p6, %p1962_p3 }
  0x11   :  { %1972 = shalt.err (!%p1969_p7)
}
  0x12   :  { %39 = dma.hbm_to_vmem [thread:$0]  %s3188_s1, 128, %s37_s18, [#allocation6]  }
  0x13   :  { %s2092_s29 = smov [#allocation8]   ;;  %s2093_s12 = smov [#allocation2]  }
  0x14   :  { %s65_s30 = sshll.u32 %s2092_s29, 4  ;;  %s26_s13 = sshll.u32 %s2093_s12, 4  ;;  %s66_s30 = int_to_ptr.vmem [resolvable:$true] %s65_s30  ;;  %s27_s13 = int_to_ptr.vmem [resolvable:$true] %s26_s13 }
  0x15   :  { %s1973_s16 = scalar_lea.hbm %s3194_s7, 1024 }
  0x16   :  { %p1974_p8 = scmp.ne.s32.totalorder %s3194_s7, %s1973_s16  ;;  %p1977_p9 = scmp.lt.u32.totalorder %s1973_s16, %s3194_s7 }
  0x18   :  { %p1979_p10 = pnand %p1977_p9, %p1974_p8 }
  0x1a   :  { %1982 = shalt.err (!%p1979_p10)
}
  0x1b   :  { %s1983_s1 = scalar_lea.vmem %s66_s30, 1024  ;;  %p1988_p12 = scmp.lt.s32.totalorder %s66_s30, %s66_s30 }
  0x1c   :  { %p1984_p11 = scmp.ne.s32.totalorder %s66_s30, %s1983_s1  ;;  %p1989_p13 = scmp.lt.s32.totalorder %s1983_s1, %s1983_s1 }
  0x1e   :  { %p1990_p0 = por %p1989_p13, %p1988_p12 }
  0x20   :  { %p1991_p1 = pnand %p1990_p0, %p1984_p11 }
  0x22   :  { %1994 = shalt.err (!%p1991_p1)
}
  0x23   :  { %s2094_s18 = smov 64   ;;  %s2095_s22 = smov 4  }
  0x24   :  { %71 = dma.hbm_to_vmem [thread:$0]  %s3194_s7, 1024, %s66_s30, [#allocation9], %s2094_s18, %s2094_s18, %s2095_s22  }
  0x25   :  { %s1995_s27 = scalar_lea.hbm %s3187_s0, 128 }
  0x26   :  { %p1996_p2 = scmp.ne.s32.totalorder %s3187_s0, %s1995_s27  ;;  %p1999_p3 = scmp.lt.u32.totalorder %s1995_s27, %s3187_s0 }
  0x28   :  { %p2001_p4 = pnand %p1999_p3, %p1996_p2 }
  0x2a   :  { %2004 = shalt.err (!%p2001_p4)
}
  0x2b   :  { %s2005_s15 = scalar_lea.vmem %s27_s13, 128  ;;  %p2010_p6 = scmp.lt.s32.totalorder %s27_s13, %s27_s13 }
  0x2c   :  { %p2006_p5 = scmp.ne.s32.totalorder %s27_s13, %s2005_s15  ;;  %p2011_p7 = scmp.lt.s32.totalorder %s2005_s15, %s2005_s15 }
  0x2e   :  { %p2012_p8 = por %p2011_p7, %p2010_p6 }
  0x30   :  { %p2013_p9 = pnand %p2012_p8, %p2006_p5 }
  0x32   :  { %2016 = shalt.err (!%p2013_p9)
}
  0x33   :  { %29 = dma.hbm_to_vmem [thread:$0]  %s3187_s0, 128, %s27_s13, [#allocation3]  }
  0x34   :  { %s2096_s16 = smov [#allocation7]   ;;  %s2097_s19 = smov [#allocation10]  }
  0x35   :  { %s51_s17 = sshll.u32 %s2096_s16, 4  ;;  %s79_s20 = sshll.u32 %s2097_s19, 4  ;;  %s52_s17 = int_to_ptr.vmem [resolvable:$true] %s51_s17  ;;  %s80_s20 = int_to_ptr.vmem [resolvable:$true] %s79_s20 }
  0x36   :  { %s2017_s23 = scalar_lea.hbm %s3192_s5, 1024 }
  0x37   :  { %p2018_p10 = scmp.ne.s32.totalorder %s3192_s5, %s2017_s23  ;;  %p2021_p11 = scmp.lt.u32.totalorder %s2017_s23, %s3192_s5 }
  0x39   :  { %p2023_p12 = pnand %p2021_p11, %p2018_p10 }
  0x3b   :  { %2026 = shalt.err (!%p2023_p12)
}
  0x3c   :  { %s2027_s0 = scalar_lea.vmem %s52_s17, 1024  ;;  %p2032_p0 = scmp.lt.s32.totalorder %s52_s17, %s52_s17 }
  0x3d   :  { %p2028_p13 = scmp.ne.s32.totalorder %s52_s17, %s2027_s0  ;;  %p2033_p1 = scmp.lt.s32.totalorder %s2027_s0, %s2027_s0 }
  0x3f   :  { %p2034_p2 = por %p2033_p1, %p2032_p0 }
  0x41   :  { %p2035_p3 = pnand %p2034_p2, %p2028_p13 }
  0x43   :  { %2038 = shalt.err (!%p2035_p3)
}
  0x44   :  { %57 = dma.hbm_to_vmem [thread:$0]  %s3192_s5, 1024, %s52_s17, [#allocation6], %s2094_s18, %s2094_s18, %s2095_s22  }
  0x45   :  { %s2039_s14 = scalar_lea.hbm %s3196_s9, 1024 }
  0x46   :  { %p2040_p4 = scmp.ne.s32.totalorder %s3196_s9, %s2039_s14  ;;  %p2043_p5 = scmp.lt.u32.totalorder %s2039_s14, %s3196_s9 }
  0x48   :  { %p2045_p6 = pnand %p2043_p5, %p2040_p4 }
  0x4a   :  { %2048 = shalt.err (!%p2045_p6)
}
  0x4b   :  { %s2049_s19 = scalar_lea.vmem %s80_s20, 1024  ;;  %p2054_p8 = scmp.lt.s32.totalorder %s80_s20, %s80_s20 }
  0x4c   :  { %p2050_p7 = scmp.ne.s32.totalorder %s80_s20, %s2049_s19  ;;  %p2055_p9 = scmp.lt.s32.totalorder %s2049_s19, %s2049_s19 }
  0x4e   :  { %p2056_p10 = por %p2055_p9, %p2054_p8 }
  0x50   :  { %p2057_p11 = pnand %p2056_p10, %p2050_p7 }
  0x52   :  { %2060 = shalt.err (!%p2057_p11)
}
  0x53   :  { %85 = dma.hbm_to_vmem [thread:$0]  %s3196_s9, 1024, %s80_s20, [#allocation9], %s2094_s18, %s2094_s18, %s2095_s22  }
  0x54   :  { %2083 = dma.done.wait [#allocation3], 128  }
  0x55   :  { %2084 = vsyncadd [#allocation3], 4294967168 }
  0x56   :  { %2085 = dma.done.wait [#allocation6], 1152  }
  0x57   :  { %2086 = vsyncadd [#allocation6], 4294966144 }
  0x58   :  { %2087 = dma.done.wait [#allocation9], 2048  }
  0x59   :  { %2088 = vsyncadd [#allocation9], 4294965248  ;;  %v167_v0 = vlaneseq  ;;  %v166_v7 = vld [vmem:[#allocation5] sm:$0xff]  ;;  %v2253_v19 = vld [vmem:[%s3189_s2] ss:$0 sm:$0xff]  ;;  %s2107_s24 = smov [#allocation11]  }
  0x5a   :  { %v3207_v35 = vmov 683565275   ;;  %v3216_v37 = vmov 2475754826   ;;  %v3224_v41 = vmov 2131351028  }
  0x5b   :  { %v2237_v1 = vshrl.u32 %v167_v0, 7  ;;  %v3226_v44 = vmov 2102212464   ;;  %v3230_v47 = vmov 920167782   ;;  %s1662_s25 = sshll.u32 %s2107_s24, 4  ;;  %s1663_s25 = int_to_ptr.vmem [resolvable:$true] %s1662_s25 }
  0x5c   :  { %v3209_v50 = vmov 1326507024   ;;  %s2061_s26 = scalar_lea.vmem %s1663_s25, 128  ;;  %p2066_p13 = scmp.lt.s32.totalorder %s1663_s25, %s1663_s25 }
  0x5d   :  { %3245 = vst [vmem:[#allocation16_spill] sm:$0xff] %v2237_v1  ;;  %v183_v2 = vsub.s32 2, %v2237_v1  ;;  %v2241_v3 = vsub.s32 0, %v2237_v1  ;;  %v190_v4 = vsub.s32 3, %v2237_v1  ;;  %v176_v5 = vsub.s32 1, %v2237_v1  ;;  %p2062_p12 = scmp.ne.s32.totalorder %s1663_s25, %s2061_s26  ;;  %p2067_p0 = scmp.lt.s32.totalorder %s2061_s26, %s2061_s26 }
  0x5e   :  { %v204_v6 = vsub.s32 5, %v2237_v1  ;;  %v197_v8 = vsub.s32 4, %v2237_v1  ;;  %v218_v9 = vsub.s32 7, %v2237_v1  ;;  %v211_v10 = vsub.s32 6, %v2237_v1  ;;  %v1904_v1 = vld [vmem:[#allocation8 + $0x8] sm:$0xff]  }
  0x5f   :  { %3246 = vst [vmem:[#allocation17_spill] sm:$0xff] %v2241_v3  ;;  %v184_v11 = vrot.slane %v166_v7, %v183_v2  ;;  %v170_v12 = vrot.slane %v166_v7, %v2241_v3  ;;  %v191_v13 = vrot.slane %v166_v7, %v190_v4  ;;  %v177_v14 = vrot.slane %v166_v7, %v176_v5  ;;  %p2068_p1 = por %p2067_p0, %p2066_p13 }
  0x60   :  { %v205_v15 = vrot.slane %v166_v7, %v204_v6  ;;  %v198_v16 = vrot.slane %v166_v7, %v197_v8  ;;  %v219_v17 = vrot.slane %v166_v7, %v218_v9  ;;  %v212_v18 = vrot.slane %v166_v7, %v211_v10  ;;  %v1894_v6 = vld [vmem:[#allocation7] sm:$0xff]  }
  0x61   :  { %186 = vbcast.lane.b32.xlu1 %v184_v11, 256  ;;  %172 = vbcast.lane.b32.xlu0 %v170_v12, 256  ;;  %p2069_p2 = pnand %p2068_p1, %p2062_p12 }
  0x62   :  { %1777 = vmatprep.subr.bf16.mxu1 %v1894_v6 }
  0x63   :  { %1778 = vmatpush3.bf16.msra.mxu1 %v1894_v6 }
  0x65   :  { %193 = vbcast.lane.b32.xlu1 %v191_v13, 256  ;;  %179 = vbcast.lane.b32.xlu0 %v177_v14, 256 }
  0x69   :  { %207 = vbcast.lane.b32.xlu1 %v205_v15, 256  ;;  %200 = vbcast.lane.b32.xlu0 %v198_v16, 256  ;;  %v1895_v16 = vld [vmem:[#allocation7 + $0x8] sm:$0xff]  }
  0x6a   :  { %1779 = vmatprep.subr.bf16.mxu1 %v1895_v16 }
  0x6b   :  { %1780 = vmatpush3.bf16.msra.mxu1 %v1895_v16 }
  0x6d   :  { %221 = vbcast.lane.b32.xlu1 %v219_v17, 256  ;;  %214 = vbcast.lane.b32.xlu0 %v212_v18, 256 }
  0xd3   :  { %v187_v20 = vpop.permute.xlu1 %186  ;;  %v173_v61 = vpop.permute.xlu0 %172 }
  0xd4   :  { %v2256_v21 = vmul.f32 %v2253_v19, %v187_v20  ;;  %v2309_v5 = vmul.f32 %v2253_v19, %v173_v61 }
  0xd6   :  { %v447_v22 = vand.u32 2139095040, %v2256_v21  ;;  %v3203_v32 = vand.u32 2147483647, %v2256_v21  ;;  %3248 = vst [vmem:[#allocation19_spill] sm:$0xff] %v2309_v5  ;;  %v241_v15 = vand.u32 2139095040, %v2309_v5 }
  0xd7   :  { %v194_v23 = vpop.permute.xlu1 %193 }
  0xd8   :  { %v448_v24 = vshrl.u32 %v447_v22, 23  ;;  %v2260_v25 = vmul.f32 %v2253_v19, %v194_v23  ;;  %v451_v52 = vand.u32 8388607, %v3203_v32 }
  0xda   :  { %3247 = vst [vmem:[#allocation18_spill] sm:$0xff] %v2260_v25  ;;  %v1685_v26 = vadd.s32 4294967169, %v448_v24  ;;  %v550_v27 = vand.u32 2139095040, %v2260_v25  ;;  %v452_v62 = vor.u32 8388608, %v451_v52  ;;  %v3202_v20 = vand.u32 2147483647, %v2260_v25 }
  0xdb   :  { %v208_v12 = vpop.permute.xlu1 %207 }
  0xdc   :  { %v454_v28 = vadd.s32 1, %v1685_v26  ;;  %v551_v30 = vshrl.u32 %v550_v27, 23  ;;  %v2315_v9 = vshll.u32 %v452_v62, 8  ;;  %v2335_v27 = vmul.f32 %v2253_v19, %v208_v12 }
  0xde   :  { %vm455_vm0 = vcmp.gt.s32.totalorder %v454_v28, 0  ;;  %v1689_v39 = vadd.s32 4294967169, %v551_v30  ;;  %3249 = vst [vmem:[#allocation20_spill] sm:$0xff] %v2335_v27  ;;  %v756_v62 = vand.u32 2139095040, %v2335_v27 }
  0xdf   :  { %v456_v29 = vsel %vm455_vm0, %v454_v28, 0 }
  0xe0   :  { %v458_v31 = vand.u32 31, %v456_v29  ;;  %v2266_v34 = vshrl.u32 %v456_v29, 5  ;;  %v557_v58 = vadd.s32 1, %v1689_v39 }
  0xe2   :  { %v2264_v33 = vsub.s32 32, %v458_v31  ;;  %v461_v36 = vshll.u32 %v3207_v35, %v458_v31  ;;  %v464_v38 = vshll.u32 %v3216_v37, %v458_v31  ;;  %v467_v43 = vshll.u32 %v3224_v41, %v458_v31 }
  0xe3   :  { %v470_v46 = vshll.u32 %v3226_v44, %v458_v31  ;;  %v473_v49 = vshll.u32 %v3230_v47, %v458_v31  ;;  %vm479_vm1 = vcmp.lt.s32.totalorder %v2266_v34, 4  ;;  %vm476_vm2 = vcmp.lt.s32.totalorder %v2266_v34, 1 }
  0xe4   :  { %v462_v40 = vshrl.u32 %v3216_v37, %v2264_v33  ;;  %v465_v42 = vshrl.u32 %v3224_v41, %v2264_v33  ;;  %v468_v45 = vshrl.u32 %v3226_v44, %v2264_v33  ;;  %v471_v48 = vshrl.u32 %v3230_v47, %v2264_v33 }
  0xe5   :  { %v474_v51 = vshrl.u32 %v3209_v50, %v2264_v33  ;;  %vm478_vm3 = vcmp.lt.s32.totalorder %v2266_v34, 3  ;;  %vm477_vm4 = vcmp.lt.s32.totalorder %v2266_v34, 2  ;;  %vm558_vm5 = vcmp.gt.s32.totalorder %v557_v58, 0 }
  0xe6   :  { %v2285_v53 = vor.u32 %v465_v42, %v464_v38  ;;  %v469_v54 = vor.u32 %v468_v45, %v467_v43  ;;  %v2287_v55 = vor.u32 %v462_v40, %v461_v36  ;;  %v472_v56 = vor.u32 %v471_v48, %v470_v46  ;;  %v1896_v42 = vld [vmem:[#allocation7 + $0x10] sm:$0xff]  }
  0xe7   :  { %v475_v57 = vor.u32 %v474_v51, %v473_v49  ;;  %v559_v10 = vsel %vm558_vm5, %v557_v58, 0  ;;  %v460_v43 = vshrl.u32 %v3207_v35, %v2264_v33  ;;  %v554_v46 = vand.u32 8388607, %v3202_v20  ;;  %1781 = vmatprep.subr.bf16.mxu1 %v1896_v42 }
  0xe8   :  { %v485_v59 = vsel %vm479_vm1, %v472_v56, 920167782  ;;  %v488_v63 = vsel %vm476_vm2, %v2285_v53, %v469_v54  ;;  %v484_v2 = vsel %vm476_vm2, %v2287_v55, %v2285_v53  ;;  %v561_v11 = vand.u32 31, %v559_v10  ;;  %1782 = vmatpush3.bf16.msra.mxu1 %v1896_v42 }
  0xe9   :  { %v489_v60 = vsel %vm479_vm1, %v475_v57, 1326507024  ;;  %v486_v4 = vsel %vm478_vm3, %v469_v54, %v485_v59  ;;  %v2330_v23 = vshrl.u32 %v559_v10, 5  ;;  %v481_v45 = vsel %vm479_vm1, %v469_v54, 2102212464 }
  0xea   :  { %v490_v0 = vsel %vm478_vm3, %v472_v56, %v489_v60  ;;  %v487_v8 = vsel %vm477_vm4, %v484_v2, %v486_v4  ;;  %v2328_v22 = vsub.s32 32, %v561_v11  ;;  %v564_v24 = vshll.u32 %v3207_v35, %v561_v11  ;;  %v180_v60 = vpop.permute.xlu0 %179 }
  0xeb   :  { %v491_v7 = vsel %vm477_vm4, %v488_v63, %v490_v0  ;;  %v2323_v17 = vmul.u32.u64.low %v2315_v9, %v487_v8  ;;  %v2324_v18 = vmul.u32.u64.high %v2315_v9, %v487_v8, %v2323_v17  ;;  %v567_v26 = vshll.u32 %v3216_v37, %v561_v11  ;;  %v1898_v8 = vld [vmem:[#allocation7 + $0x20] sm:$0xff]  }
  0xec   :  { %v2318_v13 = vmul.u32.u64.low %v2315_v9, %v491_v7  ;;  %v2319_v14 = vmul.u32.u64.high %v2315_v9, %v491_v7, %v2318_v13  ;;  %v565_v28 = vshrl.u32 %v3216_v37, %v2328_v22  ;;  %v568_v29 = vshrl.u32 %v3224_v41, %v2328_v22 }
  0xed   :  { %v570_v30 = vshll.u32 %v3224_v41, %v561_v11  ;;  %v573_v31 = vshll.u32 %v3226_v44, %v561_v11  ;;  %v571_v36 = vshrl.u32 %v3226_v44, %v2328_v22  ;;  %v574_v38 = vshrl.u32 %v3230_v47, %v2328_v22 }
  0xee   :  { %v576_v39 = vshll.u32 %v3230_v47, %v561_v11  ;;  %v577_v40 = vshrl.u32 %v3209_v50, %v2328_v22  ;;  %v2356_v48 = vor.u32 %v565_v28, %v564_v24  ;;  %v2358_v49 = vor.u32 %v568_v29, %v567_v26  ;;  %v201_v16 = vpop.permute.xlu0 %200 }
  0xef   :  { %v572_v51 = vor.u32 %v571_v36, %v570_v30  ;;  %v575_v52 = vor.u32 %v574_v38, %v573_v31  ;;  %v242_v57 = vshrl.u32 %v241_v15, 23  ;;  %vm582_vm6 = vcmp.lt.s32.totalorder %v2330_v23, 4 }
  0xf0   :  { %v578_v56 = vor.u32 %v577_v40, %v576_v39  ;;  %v480_v33 = vsel %vm476_vm2, %v460_v43, %v2287_v55  ;;  %v482_v54 = vsel %vm478_vm3, %v2285_v53, %v481_v45  ;;  %v502_v61 = vadd.s32 1, %v2324_v18  ;;  %v1897_v55 = vld [vmem:[#allocation7 + $0x18] sm:$0xff]   ;;  %v1901_v40 = vld [vmem:[#allocation7 + $0x30] sm:$0xff]  }
  0xf1   :  { %v588_v58 = vsel %vm582_vm6, %v575_v52, 920167782  ;;  %vm579_vm7 = vcmp.lt.s32.totalorder %v2330_v23, 1  ;;  %vm581_vm8 = vcmp.lt.s32.totalorder %v2330_v23, 3  ;;  %vm501_vm9 = vc.u32 %v2319_v14, %v2323_v17  ;;  %1783 = vmatprep.subr.bf16.mxu1 %v1897_v55 }
  0xf2   :  { %v592_v59 = vsel %vm582_vm6, %v578_v56, 1326507024  ;;  %v555_v53 = vor.u32 8388608, %v554_v46  ;;  %v587_v63 = vsel %vm579_vm7, %v2356_v48, %v2358_v49  ;;  %v589_v0 = vsel %vm581_vm8, %v572_v51, %v588_v58  ;;  %1784 = vmatpush3.bf16.msra.mxu1 %v1897_v55 }
  0xf3   :  { %v483_v2 = vsel %vm477_vm4, %v480_v33, %v482_v54  ;;  %v1677_v4 = vadd.s32 4294967169, %v242_v57  ;;  %v591_v6 = vsel %vm579_vm7, %v2358_v49, %v572_v51  ;;  %v593_v7 = vsel %vm581_vm8, %v575_v52, %v592_v59  ;;  %1785 = vmatprep.subr.bf16.mxu1 %v1898_v8  ;;  %v1902_v54 = vld [vmem:[#allocation7 + $0x38] sm:$0xff]  }
  0xf4   :  { %vm580_vm10 = vcmp.lt.s32.totalorder %v2330_v23, 2  ;;  %v503_v10 = vsel %vm501_vm9, %v502_v61, %v2324_v18  ;;  %v757_v34 = vshrl.u32 %v756_v62, 23  ;;  %v499_v12 = vmul.u32 %v2315_v9, %v483_v2  ;;  %v1900_v9 = vld [vmem:[#allocation7 + $0x28] sm:$0xff]  }
  0xf5   :  { %v590_v11 = vsel %vm580_vm10, %v587_v63, %v589_v0  ;;  %v594_v13 = vsel %vm580_vm10, %v591_v6, %v593_v7  ;;  %v2397_v15 = vshll.u32 %v555_v53, 8  ;;  %v248_v24 = vadd.s32 1, %v1677_v4 }
  0xf6   :  { %v2400_v26 = vmul.f32 %v2253_v19, %v180_v60  ;;  %v1697_v28 = vadd.s32 4294967169, %v757_v34  ;;  %v2402_v29 = vadd.s32 %v503_v10, %v499_v12  ;;  %1786 = vmatpush3.bf16.msra.mxu1 %v1898_v8  ;;  %v2414_v39 = vmul.f32 %v2253_v19, %v201_v16 }
  0xf7   :  { %v2405_v18 = vmul.u32.u64.low %v2397_v15, %v590_v11  ;;  %v2406_v30 = vmul.u32.u64.high %v2397_v15, %v590_v11, %v2405_v18  ;;  %v2410_v31 = vmul.u32.u64.low %v2397_v15, %v594_v13  ;;  %v2411_v36 = vmul.u32.u64.high %v2397_v15, %v594_v13, %v2410_v31  ;;  %1787 = vmatprep.subr.bf16.mxu1 %v1900_v9 }
  0xf8   :  { %v763_v38 = vadd.s32 1, %v1697_v28  ;;  %3250 = vst [vmem:[#allocation21_spill] sm:$0xff] %v2414_v39  ;;  %vm249_vm11 = vcmp.gt.s32.totalorder %v248_v24, 0  ;;  %v584_v42 = vsel %vm582_vm6, %v572_v51, 2102212464  ;;  %v344_v43 = vand.u32 2139095040, %v2400_v26 }
  0xf9   :  { %v505_v45 = vadd.s32 536870912, %v2402_v29  ;;  %v563_v46 = vshrl.u32 %v3207_v35, %v2328_v22  ;;  %v3201_v52 = vand.u32 2147483647, %v2335_v27  ;;  %v653_v33 = vand.u32 2139095040, %v2414_v39 }
  0xfa   :  { %vm764_vm12 = vcmp.gt.s32.totalorder %v763_v38, 0  ;;  %1788 = vmatpush3.bf16.msra.mxu1 %v1900_v9  ;;  %v585_v58 = vsel %vm581_vm8, %v2358_v49, %v584_v42  ;;  %v2431_v59 = vsel %vm249_vm11, %v248_v24, 0  ;;  %v345_v22 = vshrl.u32 %v344_v43, 23 }
  0xfb   :  { %v765_v56 = vsel %vm764_vm12, %v763_v38, 0  ;;  %1789 = vmatprep.subr.bf16.mxu1 %v1901_v40  ;;  %v583_v51 = vsel %vm579_vm7, %v563_v46, %v2356_v48  ;;  %v2433_v60 = vshrl.u32 %v505_v45, 30  ;;  %v605_v61 = vadd.s32 1, %v2406_v30 }
  0xfc   :  { %v767_v57 = vand.u32 31, %v765_v56  ;;  %v760_v62 = vand.u32 8388607, %v3201_v52  ;;  %v586_v48 = vsel %vm580_vm10, %v583_v51, %v585_v58  ;;  %vm604_vm13 = vc.u32 %v2411_v36, %v2405_v18 }
  0xfd   :  { %3251 = vst [vmem:[#allocation22_spill] sm:$0xff] %v2433_v60  ;;  %v654_v53 = vshrl.u32 %v653_v33, 23  ;;  %v2447_v6 = vshrl.u32 %v765_v56, 5  ;;  %v2453_v10 = vand.u32 31, %v2431_v59  ;;  %v606_v11 = vsel %vm604_vm13, %v605_v61, %v2406_v30 }
  0xfe   :  { %v768_v55 = vsub.s32 32, %v767_v57  ;;  %1790 = vmatpush3.bf16.msra.mxu1 %v1901_v40  ;;  %v770_v49 = vshll.u32 %v3207_v35, %v767_v57  ;;  %v773_v0 = vshll.u32 %v3216_v37, %v767_v57  ;;  %v776_v23 = vshll.u32 %v3224_v41, %v767_v57 }
  0xff   :  { %1791 = vmatprep.subr.bf16.mxu1 %v1902_v54  ;;  %v779_v7 = vshll.u32 %v3226_v44, %v767_v57  ;;  %v602_v13 = vmul.u32 %v2397_v15, %v586_v48  ;;  %v1681_v16 = vadd.s32 4294967169, %v345_v22  ;;  %v507_v9 = vshll.u32 %v2433_v60, 30 }
 0x100   :  { %v771_v63 = vshrl.u32 %v3216_v37, %v768_v55  ;;  %v774_v2 = vshrl.u32 %v3224_v41, %v768_v55  ;;  %v777_v4 = vshrl.u32 %v3226_v44, %v768_v55  ;;  %v780_v8 = vshrl.u32 %v3230_v47, %v768_v55 }
 0x101   :  { %v761_v31 = vor.u32 8388608, %v760_v62  ;;  %v782_v38 = vshll.u32 %v3230_v47, %v767_v57  ;;  %v783_v40 = vshrl.u32 %v3209_v50, %v768_v55  ;;  %v2460_v42 = vadd.s32 %v606_v11, %v602_v13 }
 0x102   :  { %v772_v34 = vor.u32 %v771_v63, %v770_v49  ;;  %v775_v12 = vor.u32 %v774_v2, %v773_v0  ;;  %1792 = vmatpush3.bf16.msra.mxu1 %v1902_v54  ;;  %v778_v24 = vor.u32 %v777_v4, %v776_v23  ;;  %v781_v28 = vor.u32 %v780_v8, %v779_v7 }
 0x103   :  { %vm785_vm14 = vcmp.lt.s32.totalorder %v2447_v6, 1  ;;  %vm788_vm15 = vcmp.lt.s32.totalorder %v2447_v6, 4  ;;  %v1693_v30 = vadd.s32 4294967169, %v654_v53  ;;  %v784_v43 = vor.u32 %v783_v40, %v782_v38 }
 0x104   :  { %vm787_vm0 = vcmp.lt.s32.totalorder %v2447_v6, 3  ;;  %v793_v15 = vsel %vm785_vm14, %v772_v34, %v775_v12  ;;  %v794_v45 = vsel %vm788_vm15, %v781_v28, 920167782  ;;  %vm786_vm1 = vcmp.lt.s32.totalorder %v2447_v6, 2 }
 0x105   :  { %v795_v46 = vsel %vm787_vm0, %v778_v24, %v794_v45  ;;  %v797_v57 = vsel %vm785_vm14, %v775_v12, %v778_v24  ;;  %v798_v33 = vsel %vm788_vm15, %v784_v43, 1326507024  ;;  %v3199_v54 = vand.u32 2147483647, %v2309_v5 }
 0x106   :  { %v796_v56 = vsel %vm786_vm1, %v793_v15, %v795_v46  ;;  %v2480_v51 = vsub.s32 %v2402_v29, %v507_v9  ;;  %v2483_v58 = vsub.s32 32, %v2453_v10  ;;  %v799_v22 = vsel %vm787_vm0, %v781_v28, %v798_v33 }
 0x107   :  { %v2487_v61 = vshll.u32 %v761_v31, 8  ;;  %v608_v62 = vadd.s32 536870912, %v2460_v42  ;;  %v351_v48 = vadd.s32 1, %v1681_v16  ;;  %v800_v49 = vsel %vm786_vm1, %v797_v57, %v799_v22  ;;  %v222_v31 = vpop.permute.xlu1 %221 }
 0x108   :  { %v660_v53 = vadd.s32 1, %v1693_v30  ;;  %v790_v4 = vsel %vm788_vm15, %v778_v24, 2102212464  ;;  %v510_v23 = vsub.s32 0, %v2480_v51  ;;  %v265_v7 = vshrl.u32 %v3230_v47, %v2483_v58 }
 0x109   :  { %v2493_v63 = vmul.u32.u64.low %v2487_v61, %v800_v49  ;;  %v2494_v0 = vmul.u32.u64.high %v2487_v61, %v800_v49, %v2493_v63  ;;  %v2497_v29 = vmul.u32.u64.low %v2487_v61, %v796_v56  ;;  %v2498_v2 = vmul.u32.u64.high %v2487_v61, %v796_v56, %v2497_v29 }
 0x10a   :  { %vm661_vm2 = vcmp.gt.s32.totalorder %v660_v53, 0  ;;  %v769_v8 = vshrl.u32 %v3207_v35, %v768_v55  ;;  %v3200_v11 = vand.u32 2147483647, %v2414_v39  ;;  %v2508_v13 = vshrl.u32 %v608_v62, 30 }
 0x10b   :  { %vm352_vm3 = vcmp.gt.s32.totalorder %v351_v48, 0  ;;  %v662_v16 = vsel %vm661_vm2, %v660_v53, 0  ;;  %v264_v28 = vshll.u32 %v3226_v44, %v2453_v10  ;;  %v791_v9 = vsel %vm787_vm0, %v775_v12, %v790_v4 }
 0x10c   :  { %3252 = vst [vmem:[#allocation23_spill] sm:$0xff] %v2508_v13  ;;  %v789_v24 = vsel %vm785_vm14, %v769_v8, %v772_v34  ;;  %v2518_v38 = vand.u32 8388607, %v3199_v54  ;;  %v2521_v55 = vshrl.u32 %v2431_v59, 5  ;;  %v2525_v40 = vshll.u32 %v3230_v47, %v2453_v10 }
 0x10d   :  { %v2529_v30 = vshrl.u32 %v3209_v50, %v2483_v58  ;;  %v664_v34 = vand.u32 31, %v662_v16  ;;  %v1686_v43 = vmin.u32 %v510_v23, %v2480_v51  ;;  %v2532_v12 = vor.u32 %v265_v7, %v264_v28 }
 0x10e   :  { %v2534_v15 = vsel %vm352_vm3, %v351_v48, 0  ;;  %v657_v45 = vand.u32 8388607, %v3200_v11  ;;  %v610_v59 = vshll.u32 %v2508_v13, 30  ;;  %v792_v46 = vsel %vm786_vm1, %v789_v24, %v791_v9 }
 0x10f   :  { %v665_v56 = vsub.s32 32, %v664_v34  ;;  %v2542_v57 = vmul.f32 %v2253_v19, %v222_v31  ;;  %vm810_vm4 = vc.u32 %v2494_v0, %v2497_v29  ;;  %v811_v33 = vadd.s32 1, %v2498_v2 }
 0x110   :  { %v667_v22 = vshll.u32 %v3207_v35, %v664_v34  ;;  %v670_v62 = vshll.u32 %v3216_v37, %v664_v34  ;;  %v673_v6 = vshll.u32 %v3224_v41, %v664_v34  ;;  %v663_v63 = vshrl.u32 %v662_v16, 5 }
 0x111   :  { %3253 = vst [vmem:[#allocation24_spill] sm:$0xff] %v2542_v57  ;;  %v668_v48 = vshrl.u32 %v3216_v37, %v665_v56  ;;  %v671_v49 = vshrl.u32 %v3224_v41, %v665_v56  ;;  %v674_v53 = vshrl.u32 %v3226_v44, %v665_v56  ;;  %v676_v4 = vshll.u32 %v3226_v44, %v664_v34 }
 0x112   :  { %v677_v23 = vshrl.u32 %v3230_v47, %v665_v56  ;;  %v679_v7 = vshll.u32 %v3230_v47, %v664_v34  ;;  %v680_v9 = vshrl.u32 %v3209_v50, %v665_v56  ;;  %v512_v31 = vclz %v1686_v43 }
 0x113   :  { %v669_v8 = vor.u32 %v668_v48, %v667_v22  ;;  %v672_v28 = vor.u32 %v671_v49, %v670_v62  ;;  %v675_v24 = vor.u32 %v674_v53, %v673_v6  ;;  %v269_v54 = vor.u32 %v2529_v30, %v2525_v40 }
 0x114   :  { %v2560_v11 = vand.u32 31, %v2534_v15  ;;  %v678_v52 = vor.u32 %v677_v23, %v676_v4  ;;  %v2563_v16 = vsub.s32 %v2460_v42, %v610_v59  ;;  %v808_v20 = vmul.u32 %v2487_v61, %v792_v46 }
 0x115   :  { %v658_v32 = vor.u32 8388608, %v657_v45  ;;  %v681_v34 = vor.u32 %v680_v9, %v679_v7  ;;  %v812_v22 = vsel %vm810_vm4, %v811_v33, %v2498_v2  ;;  %vm682_vm5 = vcmp.lt.s32.totalorder %v663_v63, 1 }
 0x116   :  { %vm685_vm6 = vcmp.lt.s32.totalorder %v663_v63, 4  ;;  %v962_v40 = vand.u32 2139095040, %v2542_v57  ;;  %vm684_vm7 = vcmp.lt.s32.totalorder %v663_v63, 3  ;;  %v690_v43 = vsel %vm682_vm5, %v669_v8, %v672_v28 }
 0x117   :  { %v687_v30 = vsel %vm685_vm6, %v675_v24, 2102212464  ;;  %v691_v62 = vsel %vm685_vm6, %v678_v52, 920167782  ;;  %v666_v42 = vshrl.u32 %v3207_v35, %v665_v56  ;;  %vm683_vm8 = vcmp.lt.s32.totalorder %v663_v63, 2  ;;  %v104_v56 = vld [vmem:[#allocation2] sm:$0xff] }
 0x118   :  { %v692_v59 = vsel %vm684_vm7, %v675_v24, %v691_v62  ;;  %v694_v61 = vsel %vm682_vm5, %v672_v28, %v675_v24  ;;  %v2572_v45 = vadd.s32 %v812_v22, %v808_v20  ;;  %v695_v48 = vsel %vm685_vm6, %v681_v34, 1326507024  ;;  %v1899_v20 = vld [vmem:[%s3190_s3] sm:$0xff]  }
 0x119   :  { %v693_v46 = vsel %vm683_vm8, %v690_v43, %v692_v59  ;;  %v698_v49 = vshll.u32 %v658_v32, 8  ;;  %v686_v2 = vsel %vm682_vm5, %v666_v42, %v669_v8  ;;  %v688_v33 = vsel %vm684_vm7, %v672_v28, %v687_v30 }
 0x11a   :  { %v696_v6 = vsel %vm684_vm7, %v678_v52, %v695_v48  ;;  %v963_v53 = vshrl.u32 %v962_v40, 23  ;;  %v1687_v4 = vadd.s32 4294967294, %v512_v31  ;;  %v613_v24 = vsub.s32 0, %v2563_v16 }
 0x11b   :  { %v697_v23 = vsel %vm683_vm8, %v694_v61, %v696_v6  ;;  %v2576_v7 = vmul.u32.u64.low %v698_v49, %v693_v46  ;;  %v2577_v9 = vmul.u32.u64.high %v698_v49, %v693_v46, %v2576_v7  ;;  %v814_v52 = vadd.s32 536870912, %v2572_v45 }
 0x11c   :  { %v2584_v34 = vmul.u32.u64.low %v698_v49, %v697_v23  ;;  %v2585_v32 = vmul.u32.u64.high %v698_v49, %v697_v23, %v2584_v34  ;;  %v1705_v8 = vadd.s32 4294967169, %v963_v53  ;;  %v689_v28 = vsel %vm683_vm8, %v686_v2, %v688_v33 }
 0x11d   :  { %vm273_vm9 = vcmp.lt.s32.totalorder %v2521_v55, 4  ;;  %v3206_v31 = vand.u32 2147483647, %v2542_v57  ;;  %v3204_v40 = vmov 0.0   ;;  %vm2105_vm10 = vmmov 0  }
 0x11e   :  { %v969_v22 = vadd.s32 1, %v1705_v8  ;;  %1771 = vmatprep.subr.bf16.mxu0 %v3204_v40  ;;  %1773 = vmatprep.mubr.msk.bf16.mxu0 %vm2105_vm10, %v3204_v40  ;;  %v105_v30 = vpack.c.bf16 %v104_v56, %v104_v56  ;;  %vm1688_vm11 = vcmp.lt.s32.totalorder %v1687_v4, 0  ;;  %v2597_v43 = vsel %vm273_vm9, %v2532_v12, 920167782 }
 0x11f   :  { %v708_v63 = vadd.s32 1, %v2577_v9  ;;  %1772 = vmatpush3.bf16.msra.mxu0 %v1899_v20  ;;  %vm121_vm12 = vcmask 130048   ;;  %1825 = vmatprep.subr.bf16.mxu1 %v3204_v40  ;;  %v2602_v62 = vsub.s32 32, %v2560_v11  ;;  %v705_v42 = vmul.u32 %v698_v49, %v689_v28  ;;  %v215_v20 = vpop.permute.xlu0 %214 }
 0x120   :  { %vm707_vm13 = vc.u32 %v2585_v32, %v2576_v7  ;;  %vm970_vm14 = vcmp.gt.s32.totalorder %v969_v22, 0  ;;  %v1690_v59 = vmin.u32 %v613_v24, %v2563_v16  ;;  %v2607_v61 = vshrl.u32 %v814_v52, 30 }
 0x121   :  { %v709_v46 = vsel %vm707_vm13, %v708_v63, %v2577_v9  ;;  %v971_v48 = vsel %vm970_vm14, %v969_v22, 0  ;;  %v2610_v2 = vsel %vm1688_vm11, 0, %v1687_v4  ;;  %v2614_v33 = vsel %vm273_vm9, %v269_v54, 1326507024 }
 0x122   :  { %3254 = vst [vmem:[#allocation25_spill] sm:$0xff] %v2607_v61  ;;  %v710_v6 = vadd.s32 %v709_v46, %v705_v42  ;;  %v966_v49 = vand.u32 8388607, %v3206_v31  ;;  %1774 = vmatmul.mubr.msk.bf16.vlgmr.msra.gmra.mrb[0].mxu0 %vm121_vm12, %v105_v30  ;;  %v500_v53 = vadd.s32 %v2323_v17, %v2319_v14  ;;  %v2621_v23 = vshrl.u32 %v2534_v15, 5 }
 0x123   :  { %v2625_v9 = vshll.u32 %v3226_v44, %v2560_v11  ;;  %v973_v4 = vand.u32 31, %v971_v48  ;;  %v2629_v54 = vshrl.u32 %v3230_v47, %v2602_v62  ;;  %v2633_v56 = vshll.u32 %v3230_v47, %v2560_v11 }
 0x124   :  { %v2637_v14 = vshrl.u32 %v3209_v50, %v2602_v62  ;;  %v711_v17 = vadd.s32 536870912, %v710_v6  ;;  %v520_v15 = vsub.s32 4294967266, %v2610_v2  ;;  %v615_v24 = vclz %v1690_v59 }
 0x125   :  { %v816_v34 = vshll.u32 %v2607_v61, 30  ;;  %v974_v8 = vsub.s32 32, %v973_v4  ;;  %v967_v52 = vor.u32 8388608, %v966_v49  ;;  %v976_v28 = vshll.u32 %v3207_v35, %v973_v4 }
 0x126   :  { %v979_v22 = vshll.u32 %v3216_v37, %v973_v4  ;;  %v2644_v30 = vmul.f32 %v2253_v19, %v215_v20  ;;  %v2646_v63 = vshrl.u32 %v711_v17, 30  ;;  %v972_v59 = vshrl.u32 %v971_v48, 5  ;;  %v1903_v17 = vld [vmem:[#allocation8] sm:$0xff]  }
 0x127   :  { %v977_v42 = vshrl.u32 %v3216_v37, %v974_v8  ;;  %v980_v46 = vshrl.u32 %v3224_v41, %v974_v8  ;;  %v983_v40 = vshrl.u32 %v3226_v44, %v974_v8  ;;  %v982_v31 = vshll.u32 %v3224_v41, %v973_v4  ;;  %1801 = vmatprep.subr.bf16.mxu0 %v1903_v17 }
 0x128   :  { %3255 = vst [vmem:[#allocation26_spill] sm:$0xff] %v2644_v30  ;;  %3256 = vst [vmem:[#allocation27_spill] sm:$0xff] %v2646_v63  ;;  %v985_v49 = vshll.u32 %v3226_v44, %v973_v4  ;;  %v986_v35 = vshrl.u32 %v3230_v47, %v974_v8  ;;  %v516_v50 = vsub.s32 32, %v2610_v2  ;;  %v521_v3 = vadd.s32 127, %v520_v15  ;;  %1802 = vmatpush3.bf16.msra.mxu0 %v1903_v17 }
 0x129   :  { %v978_v19 = vor.u32 %v977_v42, %v976_v28  ;;  %v981_v20 = vor.u32 %v980_v46, %v979_v22  ;;  %v984_v61 = vor.u32 %v983_v40, %v982_v31  ;;  %v988_v13 = vshll.u32 %v3230_v47, %v973_v4  ;;  %1803 = vmatprep.subr.bf16.mxu0 %v1904_v1 }
 0x12a   :  { %v987_v37 = vor.u32 %v986_v35, %v985_v49  ;;  %v3257_v57 = vmov 1326507024   ;;  %v1691_v48 = vadd.s32 4294967294, %v615_v24  ;;  %v2658_v41 = vsub.s32 %v2572_v45, %v816_v34  ;;  %v1905_v24 = vld [vmem:[#allocation8 + $0x10] sm:$0xff]  }
 0x12b   :  { %v989_v5 = vshrl.u32 %v3257_v57, %v974_v8  ;;  %v713_v44 = vshll.u32 %v2646_v63, 30  ;;  %v859_v60 = vand.u32 2139095040, %v2644_v30  ;;  %vm991_vm15 = vcmp.lt.s32.totalorder %v972_v59, 1 }
 0x12c   :  { %vm994_vm0 = vcmp.lt.s32.totalorder %v972_v59, 4  ;;  %v1007_v28 = vshll.u32 %v967_v52, 8  ;;  %v3258_v31 = vmov 683565275   ;;  %vm993_vm1 = vcmp.lt.s32.totalorder %v972_v59, 3  ;;  %1804 = vmatpush3.bf16.msra.mxu0 %v1904_v1 }
 0x12d   :  { %v990_v15 = vor.u32 %v989_v5, %v988_v13  ;;  %v975_v35 = vshrl.u32 %v3258_v31, %v974_v8  ;;  %v999_v40 = vsel %vm991_vm15, %v978_v19, %v981_v20  ;;  %v1000_v4 = vsel %vm994_vm0, %v987_v37, 920167782  ;;  %1805 = vmatprep.subr.bf16.mxu0 %v1905_v24 }
 0x12e   :  { %vm992_vm2 = vcmp.lt.s32.totalorder %v972_v59, 2  ;;  %v996_v45 = vsel %vm994_vm0, %v984_v61, 2102212464  ;;  %v1001_v34 = vsel %vm993_vm1, %v984_v61, %v1000_v4  ;;  %v1003_v22 = vsel %vm991_vm15, %v981_v20, %v984_v61 }
 0x12f   :  { %v2666_v42 = vsub.s32 %v710_v6, %v713_v44  ;;  %v1002_v5 = vsel %vm992_vm2, %v999_v40, %v1001_v34  ;;  %v1004_v13 = vsel %vm994_vm0, %v990_v15, 1326507024  ;;  %v860_v52 = vshrl.u32 %v859_v60, 23 }
 0x130   :  { %v518_v46 = vshrl.u32 %v500_v53, %v516_v50  ;;  %vm1692_vm3 = vcmp.lt.s32.totalorder %v1691_v48, 0  ;;  %v995_v8 = vsel %vm991_vm15, %v975_v35, %v978_v19  ;;  %v1005_v49 = vsel %vm993_vm1, %v987_v37, %v1004_v13  ;;  %1806 = vmatpush3.bf16.msra.mxu0 %v1905_v24 }
 0x131   :  { %v997_v17 = vsel %vm993_vm1, %v981_v20, %v996_v45  ;;  %v1006_v47 = vsel %vm992_vm2, %v1003_v22, %v1005_v49  ;;  %v2673_v4 = vmul.u32.u64.low %v1007_v28, %v1002_v5  ;;  %v2674_v63 = vmul.u32.u64.high %v1007_v28, %v1002_v5, %v2673_v4 }
 0x132   :  { %v522_v44 = vshll.u32 %v521_v3, 23  ;;  %v819_v61 = vsub.s32 0, %v2658_v41  ;;  %v2678_v60 = vmul.u32.u64.low %v1007_v28, %v1006_v47  ;;  %v2679_v50 = vmul.u32.u64.high %v1007_v28, %v1006_v47, %v2678_v60 }
 0x133   :  { %v517_v6 = vshll.u32 %v2480_v51, %v2610_v2  ;;  %v2683_v37 = vsel %vm1692_vm3, 0, %v1691_v48  ;;  %v716_v1 = vsub.s32 0, %v2666_v42  ;;  %v1701_v53 = vadd.s32 4294967169, %v860_v52 }
 0x134   :  { %v2688_v19 = vor.u32 %v2629_v54, %v2625_v9  ;;  %vm376_vm4 = vcmp.lt.s32.totalorder %v2621_v23, 4  ;;  %v998_v3 = vsel %vm992_vm2, %v995_v8, %v997_v17  ;;  %v3234_v20 = vand.u32 2147483647, %v2644_v30 }
 0x135   :  { %v2693_v47 = vor.u32 %v518_v46, %v517_v6  ;;  %v372_v51 = vor.u32 %v2637_v14, %v2633_v56  ;;  %v1017_v2 = vadd.s32 1, %v2674_v63  ;;  %v866_v48 = vadd.s32 1, %v1701_v53 }
 0x136   :  { %v2698_v15 = vor.u32 4788187, %v522_v44  ;;  %v603_v9 = vadd.s32 %v2405_v18, %v2411_v36  ;;  %v619_v54 = vsub.s32 32, %v2683_v37  ;;  %v2704_v59 = vmin.u32 %v819_v61, %v2658_v41 }
 0x137   :  { %v2707_v35 = vmin.u32 %v716_v1, %v2666_v42  ;;  %v1014_v40 = vmul.u32 %v1007_v28, %v998_v3  ;;  %vm1016_vm5 = vc.u32 %v2679_v50, %v2673_v4  ;;  %vm867_vm6 = vcmp.gt.s32.totalorder %v866_v48, 0 }
 0x138   :  { %v2714_v56 = vsel %vm376_vm4, %v2688_v19, 920167782  ;;  %v1018_v18 = vsel %vm1016_vm5, %v1017_v2, %v2674_v63  ;;  %v863_v36 = vand.u32 8388607, %v3234_v20  ;;  %v868_v14 = vsel %vm867_vm6, %v866_v48, 0 }
 0x139   :  { %v2722_v28 = vsel %vm376_vm4, %v372_v51, 1326507024  ;;  %v1019_v45 = vadd.s32 %v1018_v18, %v1014_v40  ;;  %v870_v34 = vand.u32 31, %v868_v14  ;;  %v2727_v13 = vshrl.u32 %v603_v9, %v619_v54 }
 0x13a   :  { %v623_v63 = vsub.s32 4294967266, %v2683_v37  ;;  %v821_v52 = vclz %v2704_v59  ;;  %v718_v46 = vclz %v2707_v35  ;;  %v864_v17 = vor.u32 8388608, %v863_v36 }
 0x13b   :  { %v1020_v8 = vadd.s32 536870912, %v1019_v45  ;;  %v871_v49 = vsub.s32 32, %v870_v34  ;;  %v869_v44 = vshrl.u32 %v868_v14, 5  ;;  %v873_v61 = vshll.u32 %v3258_v31, %v870_v34 }
 0x13c   :  { %v3259_v60 = vmov 2475754826   ;;  %v3261_v3 = vmov 2131351028   ;;  %v3262_v48 = vmov 2102212464   ;;  %v255_v24 = vshll.u32 %v3258_v31, %v2453_v10 }
 0x13d   :  { %v876_v6 = vshll.u32 %v3259_v60, %v870_v34  ;;  %v2734_v1 = vshrl.u32 %v1020_v8, 30  ;;  %v874_v53 = vshrl.u32 %v3259_v60, %v871_v49  ;;  %v877_v51 = vshrl.u32 %v3261_v3, %v871_v49 }
 0x13e   :  { %v879_v2 = vshll.u32 %v3261_v3, %v870_v34  ;;  %v880_v9 = vshrl.u32 %v3262_v48, %v871_v49  ;;  %v882_v54 = vshll.u32 %v3262_v48, %v870_v34  ;;  %v3263_v59 = vmov 920167782  }
 0x13f   :  { %3260 = vst [vmem:[#allocation28_spill] sm:$0xff] %v2734_v1  ;;  %v883_v35 = vshrl.u32 %v3263_v59, %v871_v49  ;;  %v885_v40 = vshll.u32 %v3263_v59, %v870_v34  ;;  %v1022_v18 = vshll.u32 %v2734_v1, 30  ;;  %v875_v36 = vor.u32 %v874_v53, %v873_v61 }
 0x140   :  { %v878_v14 = vor.u32 %v877_v51, %v876_v6  ;;  %v886_v8 = vshrl.u32 %v3257_v57, %v871_v49  ;;  %v881_v20 = vor.u32 %v880_v9, %v879_v2  ;;  %v256_v22 = vshrl.u32 %v3259_v60, %v2483_v58 }
 0x141   :  { %v884_v5 = vor.u32 %v883_v35, %v882_v54  ;;  %vm888_vm7 = vcmp.lt.s32.totalorder %v869_v44, 1  ;;  %v904_v39 = vshll.u32 %v864_v17, 8  ;;  %v259_v34 = vshrl.u32 %v3261_v3, %v2483_v58 }
 0x142   :  { %v887_v30 = vor.u32 %v886_v8, %v885_v40  ;;  %v872_v59 = vshrl.u32 %v3258_v31, %v871_v49  ;;  %vm891_vm8 = vcmp.lt.s32.totalorder %v869_v44, 4  ;;  %v896_v61 = vsel %vm888_vm7, %v875_v36, %v878_v14 }
 0x143   :  { %v262_v57 = vshrl.u32 %v3262_v48, %v2483_v58  ;;  %v2754_v6 = vsub.s32 %v1019_v45, %v1022_v18  ;;  %vm890_vm11 = vcmp.lt.s32.totalorder %v869_v44, 3  ;;  %v893_v53 = vsel %vm891_vm8, %v881_v20, 2102212464 }
 0x144   :  { %v897_v51 = vsel %vm891_vm8, %v884_v5, 920167782  ;;  %vm889_vm12 = vcmp.lt.s32.totalorder %v869_v44, 2  ;;  %v900_v9 = vsel %vm888_vm7, %v878_v14, %v881_v20  ;;  %v901_v54 = vsel %vm891_vm8, %v887_v30, 1326507024 }
 0x145   :  { %v898_v2 = vsel %vm890_vm11, %v881_v20, %v897_v51  ;;  %v892_v17 = vsel %vm888_vm7, %v872_v59, %v875_v36  ;;  %v258_v49 = vshll.u32 %v3259_v60, %v2453_v10  ;;  %v261_v40 = vshll.u32 %v3261_v3, %v2453_v10 }
 0x146   :  { %v899_v35 = vsel %vm889_vm12, %v896_v61, %v898_v2  ;;  %v894_v8 = vsel %vm890_vm11, %v878_v14, %v893_v53  ;;  %v902_v1 = vsel %vm890_vm11, %v884_v5, %v901_v54  ;;  %v1699_v27 = vadd.s32 4294967294, %v821_v52 }
 0x147   :  { %v2761_v45 = vmul.u32.u64.low %v904_v39, %v899_v35  ;;  %v2762_v18 = vmul.u32.u64.high %v904_v39, %v899_v35, %v2761_v45  ;;  %v1025_v51 = vsub.s32 0, %v2754_v6  ;;  %v903_v30 = vsel %vm889_vm12, %v900_v9, %v902_v1 }
 0x148   :  { %v257_v20 = vor.u32 %v256_v22, %v255_v24  ;;  %v2767_v36 = vmul.u32.u64.low %v904_v39, %v903_v30  ;;  %v2768_v59 = vmul.u32.u64.high %v904_v39, %v903_v30, %v2767_v36  ;;  %v260_v61 = vor.u32 %v259_v34, %v258_v49 }
 0x149   :  { %v263_v2 = vor.u32 %v262_v57, %v261_v40  ;;  %v2770_v25 = vadd.s32 127, %v623_v63  ;;  %v1695_v10 = vadd.s32 4294967294, %v718_v46  ;;  %v895_v5 = vsel %vm889_vm12, %v892_v17, %v894_v8 }
 0x14a   :  { %v246_v14 = vor.u32 8388608, %v2518_v38  ;;  %v914_v53 = vadd.s32 1, %v2762_v18  ;;  %vm270_vm13 = vcmp.lt.s32.totalorder %v2521_v55, 1  ;;  %vm272_vm14 = vcmp.lt.s32.totalorder %v2521_v55, 3 }
 0x14b   :  { %v275_v24 = vsel %vm273_vm9, %v263_v2, 2102212464  ;;  %v1706_v22 = vmin.u32 %v1025_v51, %v2754_v6  ;;  %v254_v63 = vshrl.u32 %v3258_v31, %v2483_v58  ;;  %v278_v52 = vsel %vm270_vm13, %v257_v20, %v260_v61 }
 0x14c   :  { %v280_v46 = vsel %vm272_vm14, %v263_v2, %v2597_v43  ;;  %vm1700_vm15 = vcmp.lt.s32.totalorder %v1699_v27, 0  ;;  %v911_v38 = vmul.u32 %v904_v39, %v895_v5  ;;  %vm913_vm0 = vc.u32 %v2768_v59, %v2761_v45 }
 0x14d   :  { %v282_v44 = vsel %vm270_vm13, %v260_v61, %v263_v2  ;;  %v915_v1 = vsel %vm913_vm0, %v914_v53, %v2762_v18  ;;  %vm271_vm9 = vcmp.lt.s32.totalorder %v2521_v55, 2  ;;  %v274_v34 = vsel %vm270_vm13, %v254_v63, %v257_v20 }
 0x14e   :  { %v276_v57 = vsel %vm272_vm14, %v260_v61, %v275_v24  ;;  %v916_v58 = vadd.s32 %v915_v1, %v911_v38  ;;  %v281_v9 = vsel %vm271_vm9, %v278_v52, %v280_v46  ;;  %v284_v43 = vsel %vm272_vm14, %v2532_v12, %v2614_v33 }
 0x14f   :  { %v286_v39 = vshll.u32 %v246_v14, 8  ;;  %v2795_v54 = vsel %vm1700_vm15, 0, %v1699_v27  ;;  %vm1696_vm1 = vcmp.lt.s32.totalorder %v1695_v10, 0  ;;  %v1027_v17 = vclz %v1706_v22 }
 0x150   :  { %v285_v35 = vsel %vm271_vm9, %v282_v44, %v284_v43  ;;  %v917_v49 = vadd.s32 536870912, %v916_v58  ;;  %v341_v18 = vand.u32 2147483647, %v2400_v26  ;;  %v3264_v51 = vand.u32 2147483647, %v2698_v15 }
 0x151   :  { %v2797_v40 = vmul.u32.u64.low %v286_v39, %v285_v35  ;;  %v2798_v8 = vmul.u32.u64.high %v286_v39, %v285_v35, %v2797_v40  ;;  %v3265_v30 = vcvt.s32.f32 %v2693_v47  ;;  %v277_v55 = vsel %vm271_vm9, %v274_v34, %v276_v57 }
 0x152   :  { %v2807_v12 = vmul.u32.u64.low %v286_v39, %v281_v9  ;;  %v2808_v33 = vmul.u32.u64.high %v286_v39, %v281_v9, %v2807_v12  ;;  %v3266_v27 = vshll.u32 %v2563_v16, %v2683_v37  ;;  %v625_v61 = vshll.u32 %v2770_v25, 23 }
 0x153   :  { %v2805_v20 = vmul.f32 %v3265_v30, %v3264_v51  ;;  %v809_v15 = vadd.s32 %v2497_v29, %v2494_v0  ;;  %v2820_v2 = vshrl.u32 %v917_v49, 30  ;;  %v825_v47 = vsub.s32 32, %v2795_v54 }
 0x154   :  { %v2815_v36 = vor.u32 %v2727_v13, %v3266_v27  ;;  %v829_v5 = vsub.s32 4294967266, %v2795_v54  ;;  %v2825_v14 = vsel %vm1696_vm1, 0, %v1695_v10  ;;  %v1707_v53 = vadd.s32 4294967294, %v1027_v17 }
 0x155   :  { %v919_v16 = vshll.u32 %v2820_v2, 30  ;;  %v293_v37 = vmul.u32 %v286_v39, %v277_v55  ;;  %vm295_vm2 = vc.u32 %v2798_v8, %v2807_v12  ;;  %v348_v25 = vand.u32 8388607, %v341_v18 }
 0x156   :  { %v296_v0 = vadd.s32 1, %v2808_v33  ;;  %v358_v29 = vshll.u32 %v3258_v31, %v2560_v11  ;;  %v359_v13 = vshrl.u32 %v3259_v60, %v2602_v62  ;;  %v361_v10 = vshll.u32 %v3259_v60, %v2560_v11 }
 0x157   :  { %v2839_v24 = vsub.s32 %v916_v58, %v919_v16  ;;  %v362_v22 = vshrl.u32 %v3261_v3, %v2602_v62  ;;  %v364_v63 = vshll.u32 %v3261_v3, %v2560_v11  ;;  %v365_v52 = vshrl.u32 %v3262_v48, %v2602_v62 }
 0x158   :  { %v830_v46 = vadd.s32 127, %v829_v5  ;;  %vm1708_vm3 = vcmp.lt.s32.totalorder %v1707_v53, 0  ;;  %v297_v38 = vsel %vm295_vm2, %v296_v0, %v2808_v33  ;;  %v360_v44 = vor.u32 %v359_v13, %v358_v29 }
 0x159   :  { %v922_v1 = vsub.s32 0, %v2839_v24  ;;  %v298_v34 = vadd.s32 %v297_v38, %v293_v37  ;;  %v363_v60 = vor.u32 %v362_v22, %v361_v10  ;;  %v366_v57 = vor.u32 %v365_v52, %v364_v63 }
 0x15a   :  { %v826_v58 = vshll.u32 %v2658_v41, %v2795_v54  ;;  %v726_v9 = vsub.s32 4294967266, %v2825_v14  ;;  %v349_v43 = vor.u32 8388608, %v348_v25  ;;  %vm373_vm5 = vcmp.lt.s32.totalorder %v2621_v23, 1 }
 0x15b   :  { %v1702_v11 = vmin.u32 %v922_v1, %v2839_v24  ;;  %v299_v3 = vadd.s32 536870912, %v298_v34  ;;  %vm375_vm6 = vcmp.lt.s32.totalorder %v2621_v23, 3  ;;  %v381_v48 = vsel %vm373_vm5, %v360_v44, %v363_v60 }
 0x15c   :  { %v827_v39 = vshrl.u32 %v809_v15, %v825_v47  ;;  %v831_v17 = vshll.u32 %v830_v46, 23  ;;  %v2858_v35 = vsel %vm1708_vm3, 0, %v1707_v53  ;;  %v383_v41 = vsel %vm375_vm6, %v366_v57, %v2714_v56 }
 0x15d   :  { %v924_v54 = vclz %v1702_v11  ;;  %v2863_v49 = vshrl.u32 %v299_v3, 30  ;;  %vm374_vm7 = vcmp.lt.s32.totalorder %v2621_v23, 2  ;;  %v385_v40 = vsel %vm373_vm5, %v363_v60, %v366_v57 }
 0x15e   :  { %v378_v51 = vsel %vm376_vm4, %v366_v57, 2102212464  ;;  %v384_v30 = vsel %vm374_vm7, %v381_v48, %v383_v41  ;;  %v387_v55 = vsel %vm375_vm6, %v2688_v19, %v2722_v28  ;;  %v389_v56 = vshll.u32 %v349_v43, 8 }
 0x15f   :  { %v727_v33 = vadd.s32 127, %v726_v9  ;;  %v1703_v27 = vadd.s32 4294967294, %v924_v54  ;;  %v301_v15 = vshll.u32 %v2863_v49, 30  ;;  %v357_v47 = vshrl.u32 %v3258_v31, %v2602_v62 }
 0x160   :  { %v1035_v5 = vsub.s32 4294967266, %v2858_v35  ;;  %v388_v53 = vsel %vm374_vm7, %v385_v40, %v387_v55  ;;  %v2882_v16 = vmul.u32.u64.low %v389_v56, %v384_v30  ;;  %v2883_v37 = vmul.u32.u64.high %v389_v56, %v384_v30, %v2882_v16  ;;  %v3270_v55 = vld [vmem:[#allocation18_spill] sm:$0xff] }
 0x161   :  { %vm446_vm4 = vcmp.lt.s32.totalorder %v2256_v21, 0  ;;  %v626_v19 = vor.u32 4788187, %v625_v61  ;;  %v2887_v28 = vsub.s32 %v298_v34, %v301_v15  ;;  %v377_v25 = vsel %vm373_vm5, %v357_v47, %v360_v44 }
 0x162   :  { %v379_v62 = vsel %vm375_vm6, %v363_v60, %v378_v51  ;;  %v828_v31 = vor.u32 %v827_v39, %v826_v58  ;;  %v832_v0 = vor.u32 4788187, %v831_v17  ;;  %v528_v10 = vxor.u32 2147483648, %v2805_v20 }
 0x163   :  { %v2893_v29 = vmul.u32.u64.low %v389_v56, %v388_v53  ;;  %v2894_v13 = vmul.u32.u64.high %v389_v56, %v388_v53, %v2893_v29  ;;  %v722_v22 = vsub.s32 32, %v2825_v14  ;;  %vm1704_vm8 = vcmp.lt.s32.totalorder %v1703_v27, 0 }
 0x164   :  { %v304_v61 = vsub.s32 0, %v2887_v28  ;;  %v728_v63 = vshll.u32 %v727_v33, 23  ;;  %v1036_v52 = vadd.s32 127, %v1035_v5  ;;  %v380_v46 = vsel %vm374_vm7, %v377_v25, %v379_v62 }
 0x165   :  { %v399_v38 = vadd.s32 1, %v2883_v37  ;;  %v3267_v44 = vand.u32 2147483647, %v2256_v21  ;;  %v627_v34 = vand.u32 2147483647, %v626_v19  ;;  %v629_v60 = vcvt.s32.f32 %v2815_v36 }
 0x166   :  { %v706_v57 = vadd.s32 %v2576_v7, %v2585_v32  ;;  %v1678_v58 = vmin.u32 %v304_v61, %v2887_v28  ;;  %v833_v9 = vand.u32 2147483647, %v832_v0  ;;  %v835_v43 = vcvt.s32.f32 %v828_v31 }
 0x167   :  { %vm2904_vm11 = vcmp.le.f32.partialorder %v3267_v44, 0.7853982  ;;  %v1031_v23 = vsub.s32 32, %v2858_v35  ;;  %v2913_v11 = vsel %vm1704_vm8, 0, %v1703_v27  ;;  %v396_v39 = vmul.u32 %v389_v56, %v380_v46 }
 0x168   :  { %v724_v3 = vshrl.u32 %v706_v57, %v722_v22  ;;  %v306_v48 = vclz %v1678_v58  ;;  %vm398_vm12 = vc.u32 %v2894_v13, %v2882_v16  ;;  %v729_v17 = vor.u32 4788187, %v728_v63  ;;  %v3274_v58 = vld [vmem:[#allocation20_spill] sm:$0xff] }
 0x169   :  { %v1015_v36 = vadd.s32 %v2673_v4, %v2679_v50  ;;  %v1037_v41 = vshll.u32 %v1036_v52, 23  ;;  %v400_v7 = vsel %vm398_vm12, %v399_v38, %v2883_v37  ;;  %v723_v32 = vshll.u32 %v2666_v42, %v2825_v14 }
 0x16a   :  { %v932_v54 = vsub.s32 4294967266, %v2913_v11  ;;  %v1679_v40 = vadd.s32 4294967294, %v306_v48  ;;  %v401_v51 = vadd.s32 %v400_v7, %v396_v39  ;;  %v529_v30 = vsel %vm446_vm4, %v528_v10, %v2805_v20 }
 0x16b   :  { %vm549_vm13 = vcmp.lt.s32.totalorder %v3270_v55, 0  ;;  %v630_v56 = vmul.f32 %v629_v60, %v627_v34  ;;  %v1033_v33 = vshrl.u32 %v1015_v36, %v1031_v23  ;;  %v836_v27 = vmul.f32 %v835_v43, %v833_v9 }
 0x16c   :  { %v725_v4 = vor.u32 %v724_v3, %v723_v32  ;;  %vm1680_vm14 = vcmp.lt.s32.totalorder %v1679_v40, 0  ;;  %v402_v50 = vadd.s32 536870912, %v401_v51  ;;  %v730_v15 = vand.u32 2147483647, %v729_v17 }
 0x16d   :  { %v1032_v42 = vshll.u32 %v2754_v6, %v2858_v35  ;;  %v1038_v14 = vor.u32 4788187, %v1037_v41  ;;  %v309_v47 = vsel %vm1680_vm14, 0, %v1679_v40  ;;  %v933_v5 = vadd.s32 127, %v932_v54  ;;  %v3278_v40 = vld [vmem:[#allocation21_spill] sm:$0xff] }
 0x16e   :  { %v294_v53 = vadd.s32 %v2807_v12, %v2798_v8  ;;  %v310_v37 = vsub.s32 32, %v309_v47  ;;  %v314_v20 = vsub.s32 4294967266, %v309_v47  ;;  %v532_v19 = vsel %vm2904_vm11, %v2256_v21, %v529_v30 }
 0x16f   :  { %v631_v25 = vxor.u32 2147483648, %v630_v56  ;;  %v1034_v62 = vor.u32 %v1033_v33, %v1032_v42  ;;  %v2934_v31 = vshrl.u32 %v402_v50, 30  ;;  %v732_v0 = vcvt.s32.f32 %v725_v4 }
 0x170   :  { %v928_v29 = vsub.s32 32, %v2913_v11  ;;  %v312_v6 = vshrl.u32 %v294_v53, %v310_v37  ;;  %v315_v35 = vadd.s32 127, %v314_v20  ;;  %v837_v10 = vxor.u32 2147483648, %v836_v27 }
 0x171   :  { %v1039_v22 = vand.u32 2147483647, %v1038_v14  ;;  %v311_v61 = vshll.u32 %v2887_v28, %v309_v47  ;;  %v404_v8 = vshll.u32 %v2934_v31, 30  ;;  %v733_v12 = vmul.f32 %v732_v0, %v730_v15  ;;  %v3280_v15 = vld [vmem:[#allocation19_spill] sm:$0xff]  ;;  %v3284_v47 = vld [vmem:[#allocation24_spill] sm:$0xff] }
 0x172   :  { %v912_v63 = vadd.s32 %v2761_v45, %v2768_v59  ;;  %v934_v52 = vshll.u32 %v933_v5, 23  ;;  %v316_v46 = vshll.u32 %v315_v35, 23  ;;  %v3271_v38 = vand.u32 2147483647, %v3270_v55 }
 0x173   :  { %v1041_v34 = vcvt.s32.f32 %v1034_v62  ;;  %v313_v60 = vor.u32 %v312_v6, %v311_v61  ;;  %v2947_v57 = vsub.s32 %v401_v51, %v404_v8  ;;  %v632_v28 = vsel %vm549_vm13, %v631_v25, %v630_v56 }
 0x174   :  { %vm2943_vm15 = vcmp.le.f32.partialorder %v3271_v38, 0.7853982  ;;  %vm755_vm0 = vcmp.lt.s32.totalorder %v3274_v58, 0  ;;  %v930_v9 = vshrl.u32 %v912_v63, %v928_v29  ;;  %v317_v43 = vor.u32 4788187, %v316_v46 }
 0x175   :  { %1919 = vcosq.f32 %v532_v19  ;;  %v838_v45 = vsel %vm755_vm0, %v837_v10, %v836_v27  ;;  %v1042_v59 = vmul.f32 %v1041_v34, %v1039_v22  ;;  %v407_v23 = vsub.s32 0, %v2947_v57  ;;  %v1906_v34 = vld [vmem:[#allocation8 + $0x18] sm:$0xff]  }
 0x176   :  { %v734_v3 = vxor.u32 2147483648, %v733_v12  ;;  %v929_v48 = vshll.u32 %v2839_v24, %v2913_v11  ;;  %v935_v39 = vor.u32 4788187, %v934_v52  ;;  %v318_v17 = vand.u32 2147483647, %v317_v43  ;;  %v3279_v24 = vld [vmem:[#allocation22_spill] sm:$0xff]  ;;  %1807 = vmatprep.subr.bf16.mxu0 %v1906_v34 }
 0x177   :  { %1921 = vsinq.f32 %v532_v19  ;;  %v635_v36 = vsel %vm2943_vm15, %v3270_v55, %v632_v28  ;;  %v320_v41 = vcvt.s32.f32 %v313_v60  ;;  %v1682_v7 = vmin.u32 %v407_v23, %v2947_v57  ;;  %v3288_v52 = vld [vmem:[#allocation26_spill] sm:$0xff]  ;;  %v3292_v23 = vld [vmem:[#allocation23_spill] sm:$0xff]  ;;  %1808 = vmatpush3.bf16.msra.mxu0 %v1906_v34 }
 0x178   :  { %v3275_v32 = vand.u32 2147483647, %v3274_v58  ;;  %vm652_vm1 = vcmp.lt.s32.totalorder %v3278_v40, 0  ;;  %v931_v51 = vor.u32 %v930_v9, %v929_v48  ;;  %v530_v11 = vsub.s32 4, %v3279_v24 }
 0x179   :  { %v1043_v56 = vxor.u32 2147483648, %v1042_v59  ;;  %v321_v33 = vmul.f32 %v320_v41, %v318_v17  ;;  %v409_v27 = vclz %v1682_v7  ;;  %1923 = vcosq.f32 %v635_v36 }
 0x17a   :  { %vm2963_vm9 = vcmp.le.f32.partialorder %v3275_v32, 0.7853982  ;;  %v735_v4 = vsel %vm652_vm1, %v734_v3, %v733_v12  ;;  %v936_v50 = vand.u32 2147483647, %v935_v39  ;;  %vm240_vm2 = vcmp.lt.s32.totalorder %v3280_v15, 0 }
 0x17b   :  { %v841_v30 = vsel %vm2963_vm9, %v3274_v58, %v838_v45  ;;  %1925 = vsinq.f32 %v635_v36  ;;  %v3281_v42 = vand.u32 2147483647, %v3278_v40  ;;  %v3285_v5 = vand.u32 2147483647, %v3284_v47 }
 0x17c   :  { %v1683_v37 = vadd.s32 4294967294, %v409_v27  ;;  %1927 = vcosq.f32 %v841_v30  ;;  %vm961_vm6 = vcmp.lt.s32.totalorder %v3284_v47, 0  ;;  %v938_v20 = vcvt.s32.f32 %v931_v51 }
 0x17d   :  { %vm2977_vm3 = vcmp.le.f32.partialorder %v3281_v42, 0.7853982  ;;  %vm2983_vm5 = vcmp.le.f32.partialorder %v3285_v5, 0.7853982  ;;  %v531_v19 = vsel %vm446_vm4, %v530_v11, %v3279_v24  ;;  %v1044_v62 = vsel %vm961_vm6, %v1043_v56, %v1042_v59 }
 0x17e   :  { %v738_v25 = vsel %vm2977_vm3, %v3278_v40, %v735_v4  ;;  %v322_v0 = vxor.u32 2147483648, %v321_v33  ;;  %vm1684_vm7 = vcmp.lt.s32.totalorder %v1683_v37, 0  ;;  %1929 = vsinq.f32 %v841_v30  ;;  %v3298_v30 = vld [vmem:[#allocation27_spill] sm:$0xff] }
 0x17f   :  { %v939_v29 = vmul.f32 %v938_v20, %v936_v50  ;;  %v324_v6 = vsub.s32 4, %v2863_v49  ;;  %v412_v35 = vsel %vm1684_vm7, 0, %v1683_v37  ;;  %v1920_v10 = vpop.eup %1919  ;;  %v397_v22 = vadd.s32 %v2882_v16, %v2894_v13  ;;  %v1907_v16 = vld [vmem:[#allocation8 + $0x20] sm:$0xff]  }
 0x180   :  { %v413_v61 = vsub.s32 32, %v412_v35  ;;  %v417_v8 = vsub.s32 4294967266, %v412_v35  ;;  %v533_v12 = vsel %vm2904_vm11, 0, %v531_v19  ;;  %1931 = vcosq.f32 %v738_v25  ;;  %1809 = vmatprep.subr.bf16.mxu0 %v1907_v16 }
 0x181   :  { %v1047_v63 = vsel %vm2983_vm5, %v3284_v47, %v1044_v62  ;;  %vm858_vm4 = vcmp.lt.s32.totalorder %v3288_v52, 0  ;;  %v3289_v46 = vand.u32 2147483647, %v3280_v15  ;;  %v1922_v13 = vpop.eup %1921  ;;  %v323_v1 = vsel %vm240_vm2, %v322_v0, %v321_v33  ;;  %v3299_v33 = vld [vmem:[#allocation25_spill] sm:$0xff]  ;;  %1810 = vmatpush3.bf16.msra.mxu0 %v1907_v16 }
 0x182   :  { %v414_v60 = vshll.u32 %v2947_v57, %v412_v35  ;;  %v415_v28 = vshrl.u32 %v397_v22, %v413_v61  ;;  %v418_v9 = vadd.s32 127, %v417_v8  ;;  %v940_v43 = vxor.u32 2147483648, %v939_v29 }
 0x183   :  { %vm3007_vm8 = vcmp.le.f32.partialorder %v3289_v46, 0.7853982  ;;  %v325_v45 = vsel %vm240_vm2, %v324_v6, %v2863_v49  ;;  %v537_v59 = vand.u32 3, %v533_v12  ;;  %v633_v3 = vsub.s32 4, %v3292_v23  ;;  %v3024_v36 = vpop.eup %1923 }
 0x184   :  { %1933 = vsinq.f32 %v738_v25  ;;  %v3293_v48 = vand.u32 2147483647, %v3288_v52  ;;  %v416_v17 = vor.u32 %v415_v28, %v414_v60  ;;  %v419_v57 = vshll.u32 %v418_v9, 23  ;;  %v3300_v9 = vld [vmem:[#allocation28_spill] sm:$0xff] }
 0x185   :  { %1935 = vcosq.f32 %v1047_v63  ;;  %v326_v49 = vsel %vm3007_vm8, %v3280_v15, %v323_v1  ;;  %v540_v41 = vxor.u32 2147483648, %v1922_v13  ;;  %v543_v7 = vxor.u32 2147483648, %v1920_v10  ;;  %v3029_v32 = vpop.eup %1925 }
 0x186   :  { %vm3020_vm11 = vcmp.le.f32.partialorder %v3293_v48, 0.7853982  ;;  %v327_v51 = vsel %vm3007_vm8, 0, %v325_v45  ;;  %vm3035_vm12 = vcmp.le.f32.partialorder %v341_v18, 0.7853982  ;;  %v736_v56 = vsub.s32 4, %v3298_v30  ;;  %v3041_v4 = vpop.eup %1927 }
 0x187   :  { %v420_v11 = vor.u32 4788187, %v419_v57  ;;  %v839_v27 = vsub.s32 4, %v3299_v33  ;;  %v941_v50 = vsel %vm858_vm4, %v940_v43, %v939_v29  ;;  %vm539_vm14 = vcmp.eq.s32.totalorder %v537_v59, 0 }
 0x188   :  { %vm542_vm2 = vcmp.eq.s32.totalorder %v537_v59, 2  ;;  %v634_v42 = vsel %vm549_vm13, %v633_v3, %v3292_v23  ;;  %1937 = vcosq.f32 %v326_v49  ;;  %v423_v5 = vcvt.s32.f32 %v416_v17  ;;  %v3049_v20 = vpop.eup %1929 }
 0x189   :  { %v421_v18 = vand.u32 2147483647, %v420_v11  ;;  %v427_v37 = vsub.s32 4, %v2934_v31  ;;  %1939 = vsinq.f32 %v326_v49  ;;  %vm343_vm7 = vcmp.lt.s32.totalorder %v2400_v26, 0 }
 0x18a   :  { %v541_v19 = vsel %vm539_vm14, %v1920_v10, %v540_v41  ;;  %v544_v25 = vsel %vm542_vm2, %v543_v7, %v1922_v13  ;;  %v944_v62 = vsel %vm3020_vm11, %v3288_v52, %v941_v50  ;;  %v737_v29 = vsel %vm652_vm1, %v736_v56, %v3298_v30  ;;  %v1932_v35 = vpop.eup %1931 }
 0x18b   :  { %v424_v0 = vmul.f32 %v423_v5, %v421_v18  ;;  %v840_v6 = vsel %vm755_vm0, %v839_v27, %v3299_v33  ;;  %1941 = vsinq.f32 %v1047_v63  ;;  %v3061_v22 = vand.u32 3, %v327_v51 }
 0x18c   :  { %vm538_vm13 = vcmp.lt.s32.totalorder %v537_v59, 2  ;;  %v636_v10 = vsel %vm2943_vm15, 0, %v634_v42  ;;  %v428_v8 = vsel %vm343_vm7, %v427_v37, %v2934_v31  ;;  %vm536_vm8 = vweird.f32 %v2256_v21 }
 0x18d   :  { %v425_v61 = vxor.u32 2147483648, %v424_v0  ;;  %v545_v12 = vsel %vm538_vm13, %v541_v19, %v544_v25  ;;  %1943 = vsinq.f32 %v944_v62  ;;  %v643_v46 = vxor.u32 2147483648, %v3029_v32 }
 0x18e   :  { %v739_v63 = vsel %vm2977_vm3, 0, %v737_v29  ;;  %v842_v38 = vsel %vm2963_vm9, 0, %v840_v6  ;;  %v1934_v34 = vpop.eup %1933  ;;  %1945 = vcosq.f32 %v944_v62  ;;  %v640_v16 = vand.u32 3, %v636_v10 }
 0x18f   :  { %v426_v44 = vsel %vm343_vm7, %v425_v61, %v424_v0  ;;  %v646_v31 = vxor.u32 2147483648, %v3024_v36  ;;  %v3077_v13 = vpop.eup %1935  ;;  %v430_v14 = vsel %vm3035_vm12, 0, %v428_v8  ;;  %v3084_v1 = vsel %vm536_vm8, nan, %v545_v12 }
 0x190   :  { %v429_v21 = vsel %vm3035_vm12, %v2400_v26, %v426_v44  ;;  %v942_v54 = vsub.s32 4, %v2820_v2  ;;  %v743_v60 = vand.u32 3, %v739_v63  ;;  %v846_v28 = vand.u32 3, %v842_v38 }
 0x191   :  { %1947 = vcosq.f32 %v429_v21  ;;  %v1045_v43 = vsub.s32 4, %v3300_v9  ;;  %vm333_vm15 = vcmp.eq.s32.totalorder %v3061_v22, 0  ;;  %vm336_vm0 = vcmp.eq.s32.totalorder %v3061_v22, 2 }
 0x192   :  { %1949 = vsinq.f32 %v429_v21  ;;  %v746_v45 = vxor.u32 2147483648, %v1934_v34  ;;  %v749_v59 = vxor.u32 2147483648, %v1932_v35  ;;  %v849_v23 = vxor.u32 2147483648, %v3049_v20  ;;  %v1938_v3 = vpop.eup %1937 }
 0x193   :  { %v3091_v48 = vand.u32 3, %v430_v14  ;;  %vm642_vm9 = vcmp.eq.s32.totalorder %v640_v16, 0  ;;  %vm645_vm1 = vcmp.eq.s32.totalorder %v640_v16, 2  ;;  %v852_v17 = vxor.u32 2147483648, %v3041_v4  ;;  %v1940_v57 = vpop.eup %1939 }
 0x194   :  { %vm639_vm3 = vweird.f32 %v3270_v55  ;;  %vm641_vm12 = vcmp.lt.s32.totalorder %v640_v16, 2  ;;  %v644_v49 = vsel %vm642_vm9, %v3024_v36, %v643_v46  ;;  %v647_v41 = vsel %vm645_vm1, %v646_v31, %v3029_v32 }
 0x195   :  { %v943_v7 = vsel %vm858_vm4, %v942_v54, %v2820_v2  ;;  %vm332_vm14 = vcmp.lt.s32.totalorder %v3061_v22, 2  ;;  %vm745_vm2 = vcmp.eq.s32.totalorder %v743_v60, 0  ;;  %vm748_vm7 = vcmp.eq.s32.totalorder %v743_v60, 2  ;;  %v1942_v24 = vpop.eup %1941 }
 0x196   :  { %vm848_vm13 = vcmp.eq.s32.totalorder %v846_v28, 0  ;;  %v1046_v51 = vsel %vm961_vm6, %v1045_v43, %v3300_v9  ;;  %v747_v11 = vsel %vm745_vm2, %v1932_v35, %v746_v45  ;;  %v750_v30 = vsel %vm748_vm7, %v749_v59, %v1934_v34  ;;  %v1908_v59 = vld [vmem:[#allocation8 + $0x28] sm:$0xff]  }
 0x197   :  { %v850_v36 = vsel %vm848_vm13, %v3041_v4, %v849_v23  ;;  %vm851_vm8 = vcmp.eq.s32.totalorder %v846_v28, 2  ;;  %v334_v32 = vxor.u32 2147483648, %v1940_v57  ;;  %v337_v56 = vxor.u32 2147483648, %v1938_v3  ;;  %v1944_v27 = vpop.eup %1943  ;;  %1811 = vmatprep.subr.bf16.mxu0 %v1908_v59  ;;  %v1909_v23 = vld [vmem:[#allocation8 + $0x30] sm:$0xff]  }
 0x198   :  { %v853_v33 = vsel %vm851_vm8, %v852_v17, %v3049_v20  ;;  %v945_v2 = vsel %vm3020_vm11, 0, %v943_v7  ;;  %vm330_vm4 = vweird.f32 %v3280_v15  ;;  %vm433_vm9 = vweird.f32 %v2400_v26  ;;  %v1946_v50 = vpop.eup %1945  ;;  %1812 = vmatpush3.bf16.msra.mxu0 %v1908_v59 }
 0x199   :  { %vm435_vm6 = vcmp.lt.s32.totalorder %v3091_v48, 2  ;;  %vm436_vm1 = vcmp.eq.s32.totalorder %v3091_v48, 0  ;;  %vm439_vm2 = vcmp.eq.s32.totalorder %v3091_v48, 2  ;;  %v1048_v4 = vsel %vm2983_vm5, 0, %v1046_v51  ;;  %1813 = vmatprep.subr.bf16.mxu0 %v1909_v23  ;;  %v1673_v48 = vld [vmem:[%s3191_s4] ss:$0 sm:$0xff] }
 0x19a   :  { %v648_v42 = vsel %vm641_vm12, %v644_v49, %v647_v41  ;;  %vm742_vm7 = vweird.f32 %v3278_v40  ;;  %vm744_vm11 = vcmp.lt.s32.totalorder %v743_v60, 2  ;;  %vm847_vm13 = vcmp.lt.s32.totalorder %v846_v28, 2  ;;  %v3302_v41 = vld [vmem:[#allocation16_spill] sm:$0xff] }
 0x19b   :  { %v751_v39 = vsel %vm744_vm11, %v747_v11, %v750_v30  ;;  %vm845_vm8 = vweird.f32 %v3274_v58  ;;  %v854_v18 = vsel %vm847_vm13, %v850_v36, %v853_v33  ;;  %v949_v5 = vand.u32 3, %v945_v2  ;;  %v1948_v37 = vpop.eup %1947  ;;  %v1709_v33 = vld [vmem:[%s3193_s6] ss:$0 sm:$0xff] }
 0x19c   :  { %v335_v20 = vsel %vm333_vm15, %v1938_v3, %v334_v32  ;;  %v338_v53 = vsel %vm336_vm0, %v337_v56, %v1940_v57  ;;  %v952_v19 = vxor.u32 2147483648, %v1944_v27  ;;  %v1052_v25 = vand.u32 3, %v1048_v4  ;;  %v1950_v62 = vpop.eup %1949  ;;  %1814 = vmatpush3.bf16.msra.mxu0 %v1909_v23 }
 0x19d   :  { %v440_v0 = vxor.u32 2147483648, %v1948_v37  ;;  %v955_v29 = vxor.u32 2147483648, %v1946_v50  ;;  %v1055_v6 = vxor.u32 2147483648, %v1942_v24  ;;  %v1058_v35 = vxor.u32 2147483648, %v3077_v13 }
 0x19e   :  { %v437_v10 = vxor.u32 2147483648, %v1950_v62  ;;  %v649_v61 = vsel %vm639_vm3, nan, %v648_v42  ;;  %v752_v8 = vsel %vm742_vm7, nan, %v751_v39  ;;  %v855_v12 = vsel %vm845_vm8, nan, %v854_v18  ;;  %v3303_v42 = vld [vmem:[#allocation17_spill] sm:$0xff] }
 0x19f   :  { %v339_v46 = vsel %vm332_vm14, %v335_v20, %v338_v53  ;;  %v441_v63 = vsel %vm439_vm2, %v440_v0, %v1950_v62  ;;  %vm951_vm5 = vcmp.eq.s32.totalorder %v949_v5, 0  ;;  %vm954_vm15 = vcmp.eq.s32.totalorder %v949_v5, 2 }
 0x1a0   :  { %v438_v38 = vsel %vm436_vm1, %v1948_v37, %v437_v10  ;;  %v953_v34 = vsel %vm951_vm5, %v1946_v50, %v952_v19  ;;  %vm1054_vm0 = vcmp.eq.s32.totalorder %v1052_v25, 0  ;;  %vm1057_vm3 = vcmp.eq.s32.totalorder %v1052_v25, 2 }
 0x1a1   :  { %v442_v55 = vsel %vm435_vm6, %v438_v38, %v441_v63  ;;  %v956_v40 = vsel %vm954_vm15, %v955_v29, %v1944_v27  ;;  %v1056_v58 = vsel %vm1054_vm0, %v3077_v13, %v1055_v6  ;;  %v1059_v44 = vsel %vm1057_vm3, %v1058_v35, %v1942_v24 }
 0x1a2   :  { %v340_v22 = vsel %vm330_vm4, nan, %v339_v46  ;;  %v443_v16 = vsel %vm433_vm9, nan, %v442_v55  ;;  %v1063_v31 = vpack.c.bf16 %v649_v61, %v3084_v1  ;;  %v1064_v14 = vpack.c.bf16 %v855_v12, %v752_v8 }
 0x1a3   :  { %v1062_v21 = vpack.c.bf16 %v443_v16, %v340_v22  ;;  %vm950_vm12 = vcmp.lt.s32.totalorder %v949_v5, 2  ;;  %vm1053_vm14 = vcmp.lt.s32.totalorder %v1052_v25, 2  ;;  %vm948_vm6 = vweird.f32 %v3288_v52  ;;  %v1910_v52 = vld [vmem:[#allocation8 + $0x38] sm:$0xff]  }
 0x1a4   :  { %v957_v54 = vsel %vm950_vm12, %v953_v34, %v956_v40  ;;  %v1060_v60 = vsel %vm1053_vm14, %v1056_v58, %v1059_v44  ;;  %vm1051_vm1 = vweird.f32 %v3284_v47  ;;  %v3301_v26 = vmov 0.0   ;;  %1815 = vmatprep.subr.bf16.mxu0 %v1910_v52 }
 0x1a5   :  { %1793 = vmatprep.mubr.bf16.mxu1 %v1062_v21  ;;  %v958_v15 = vsel %vm948_vm6, nan, %v957_v54  ;;  %v1061_v13 = vsel %vm1051_vm1, nan, %v1060_v60  ;;  %1816 = vmatpush3.bf16.msra.mxu0 %v1910_v52  ;;  %v2106_v47 = vmov 1966171168   ;;  %vm1553_vm4 = vcmask 1042434  }
 0x1a6   :  { %1794 = vmatmul.mubr.bf16.vlgmr.msra.gmra.mrb[0].mxu1 %v1063_v31  ;;  %v1065_v28 = vpack.c.bf16 %v1061_v13, %v958_v15  ;;  %v1213_v3 = vunpack.c.l.s4 %v2106_v47  ;;  %vm1555_vm9 = vcmask 1043459   ;;  %vm1557_vm2 = vcmask 1044484  }
 0x1a7   :  { %1797 = vmatprep.mubr.bf16.mxu1 %v1064_v14  ;;  %vm1559_vm7 = vcmask 1045509   ;;  %vm1561_vm11 = vcmask 1046534   ;;  %vm1563_vm13 = vcmask 1047559  }
 0x1a8   :  { %v1214_v57 = vunpack.c.0.s8 %v1213_v3 }
 0x1aa   :  { %v1217_v7 = vsub.s32 %v1214_v57, %v3302_v41  ;;  %v1911_v57 = vld [vmem:[#allocation10] sm:$0xff]   ;;  %v1913_v41 = vld [vmem:[#allocation10 + $0x10] sm:$0xff]  }
 0x1ab   :  { %1826 = vmatpush3.bf16.msra.mxu1 %v1911_v57 }
 0x1ac   :  { %1827 = vmatprep.subr.bf16.mxu1 %v3301_v26 }
 0x1ae   :  { %1798 = vmatmul.mubr.bf16.gmra.mrb[4].mxu1 %v1065_v28 }
 0x1af   :  { %1841 = vmatprep.mubr.msk.bf16.mxu1 %vm2105_vm10, %v3301_v26  ;;  %vm1551_vm10 = vcmask 1041409  }
 0x1f5   :  { %v159_v1 = vpop.f32.mrb[0].mxu0 }
 0x1f6   :  { %v1775_v9 = vpop.f32.mrb[1].mxu0  ;;  %v160_v17 = vadd.f32 %v1673_v48, %v159_v1 }
 0x1f7   :  { %v162_v43 = vpop.f32.mrb[2].mxu0 }
 0x1f8   :  { %v1776_v45 = vpop.f32.mrb[3].mxu0  ;;  %v165_v49 = vmax.f32 %v160_v17, 0.0 }
 0x1fa   :  { %v1218_v51 = vrot.slane %v165_v49, %v1217_v7  ;;  %v1211_v11 = vcombine.high %v165_v49, %v165_v49  ;;  %v1912_v49 = vld [vmem:[#allocation10 + $0x8] sm:$0xff]  }
 0x1fb   :  { %1828 = vmatpush3.bf16.msra.mxu1 %v1912_v49 }
 0x1fc   :  { %v1226_v24 = vcombine.high %v1218_v51, %v1218_v51  ;;  %v1234_v30 = vrot.slane %v1218_v51, %v1217_v7  ;;  %v1225_v32 = vrot.slane %v1211_v11, %v1217_v7  ;;  %1829 = vmatprep.subr.bf16.mxu1 %v3301_v26  ;;  %v1915_v51 = vld [vmem:[#allocation10 + $0x20] sm:$0xff]   ;;  %v1917_v11 = vld [vmem:[#allocation10 + $0x30] sm:$0xff]  }
 0x1fe   :  { %v1248_v36 = vrot.slane %v1226_v24, %v1217_v7  ;;  %v1256_v56 = vcombine.high %v1234_v30, %v1234_v30  ;;  %v1227_v4 = vcombine.high %v1225_v32, %v1225_v32  ;;  %v1263_v37 = vrot.slane %v1234_v30, %v3303_v42  ;;  %v1916_v24 = vld [vmem:[#allocation10 + $0x28] sm:$0xff]   ;;  %v1918_v30 = vld [vmem:[#allocation10 + $0x38] sm:$0xff]  }
 0x1ff   :  { %v1241_v53 = vrot.slane %v1225_v32, %v1217_v7  ;;  %1830 = vmatpush3.bf16.msra.mxu1 %v1913_v41 }
 0x200   :  { %v1258_v2 = vcombine.high %v1248_v36, %v1248_v36  ;;  %v1271_v39 = vrot.slane %v1256_v56, %v3303_v42  ;;  %v1267_v35 = vrot.slane %v1248_v36, %v3303_v42  ;;  %v1255_v8 = vrot.slane %v1227_v4, %v1217_v7  ;;  %v1914_v7 = vld [vmem:[#allocation10 + $0x18] sm:$0xff]   ;;  %1831 = vmatprep.subr.bf16.mxu1 %v3301_v26  ;;  %v1718_v36 = vld [vmem:[%s3195_s8] ss:$0 sm:$0xff] }
 0x201   :  { %v1257_v38 = vcombine.high %v1241_v53, %v1241_v53  ;;  %v1279_v28 = vrot.slane %v1241_v53, %v3303_v42 }
 0x202   :  { %v1275_v62 = vrot.slane %v1258_v2, %v3303_v42  ;;  %v1259_v22 = vcombine.high %v1255_v8, %v1255_v8  ;;  %v1283_v52 = vrot.slane %v1255_v8, %v3303_v42 }
 0x203   :  { %v1287_v54 = vrot.slane %v1257_v38, %v3303_v42  ;;  %1832 = vmatpush3.bf16.msra.mxu1 %v1914_v7 }
 0x204   :  { %v1291_v45 = vrot.slane %v1259_v22, %v3303_v42  ;;  %1833 = vmatprep.subr.bf16.mxu1 %v3301_v26 }
 0x207   :  { %1834 = vmatpush3.bf16.msra.mxu1 %v1915_v51 }
 0x208   :  { %1835 = vmatprep.subr.bf16.mxu1 %v3301_v26 }
 0x20b   :  { %1836 = vmatpush3.bf16.msra.mxu1 %v1916_v24 }
 0x20c   :  { %1837 = vmatprep.subr.bf16.mxu1 %v3301_v26 }
 0x20f   :  { %1838 = vmatpush3.bf16.msra.mxu1 %v1917_v11 }
 0x210   :  { %1839 = vmatprep.subr.bf16.mxu1 %v3301_v26 }
 0x213   :  { %1840 = vmatpush3.bf16.msra.mxu1 %v1918_v30 }
 0x279   :  { %v1795_v27 = vpop.f32.mrb[0].mxu1 }
 0x27a   :  { %v1180_v50 = vadd.f32 %v1795_v27, %v1709_v33  ;;  %v1171_v18 = vpop.f32.mrb[1].mxu1 }
 0x27b   :  { %v1172_v5 = vadd.f32 %v1709_v33, %v1171_v18  ;;  %v1796_v20 = vpop.f32.mrb[2].mxu1 }
 0x27c   :  { %v1204_v19 = vmax.f32 %v1180_v50, 0.0  ;;  %v1183_v25 = vadd.f32 %v1796_v20, %v1709_v33  ;;  %v1174_v0 = vpop.f32.mrb[3].mxu1 }
 0x27d   :  { %v1202_v29 = vmax.f32 %v1172_v5, 0.0  ;;  %v1175_v6 = vadd.f32 %v1709_v33, %v1174_v0 }
 0x27e   :  { %v1302_v10 = vmul.f32 %v1271_v39, %v1204_v19  ;;  %v1205_v61 = vmax.f32 %v1183_v25, 0.0 }
 0x27f   :  { %v1300_v12 = vmul.f32 %v1263_v37, %v1202_v29  ;;  %v1203_v46 = vmax.f32 %v1175_v6, 0.0 }
 0x280   :  { %v1303_v63 = vmul.f32 %v1275_v62, %v1205_v61 }
 0x281   :  { %v1301_v34 = vmul.f32 %v1267_v35, %v1203_v46  ;;  %v1799_v55 = vpop.f32.mrb[4].mxu1 }
 0x282   :  { %v1309_v40 = vpack.c.bf16 %v1303_v63, %v1302_v10  ;;  %v1196_v58 = vadd.f32 %v1799_v55, %v1709_v33  ;;  %v1187_v44 = vpop.f32.mrb[5].mxu1 }
 0x283   :  { %v1188_v16 = vadd.f32 %v1709_v33, %v1187_v44  ;;  %v1800_v31 = vpop.f32.mrb[6].mxu1  ;;  %v1308_v21 = vpack.c.bf16 %v1301_v34, %v1300_v12 }
 0x284   :  { %v1208_v14 = vmax.f32 %v1196_v58, 0.0  ;;  %v1199_v60 = vadd.f32 %v1800_v31, %v1709_v33  ;;  %v1190_v15 = vpop.f32.mrb[7].mxu1 }
 0x285   :  { %v1206_v13 = vmax.f32 %v1188_v16, 0.0  ;;  %v1191_v1 = vadd.f32 %v1709_v33, %v1190_v15  ;;  %1817 = vmatprep.mubr.bf16.mxu0 %v1308_v21 }
 0x286   :  { %v1306_v9 = vmul.f32 %v1287_v54, %v1208_v14  ;;  %v1209_v43 = vmax.f32 %v1199_v60, 0.0  ;;  %1818 = vmatmul.mubr.bf16.vlgmr.msra.gmra.mrb[4].mxu0 %v1309_v40 }
 0x287   :  { %v1304_v59 = vmul.f32 %v1279_v28, %v1206_v13  ;;  %v1207_v23 = vmax.f32 %v1191_v1, 0.0 }
 0x288   :  { %v1307_v47 = vmul.f32 %v1291_v45, %v1209_v43 }
 0x289   :  { %v1305_v3 = vmul.f32 %v1283_v52, %v1207_v23 }
 0x28a   :  { %v1311_v48 = vpack.c.bf16 %v1307_v47, %v1306_v9 }
 0x28b   :  { %v1310_v17 = vpack.c.bf16 %v1305_v3, %v1304_v59 }
 0x28d   :  { %1821 = vmatprep.mubr.bf16.mxu0 %v1310_v17 }
 0x28e   :  { %1822 = vmatmul.mubr.bf16.gmra.mrb[8].mxu0 %v1311_v48 }
 0x359   :  { %v1819_v32 = vpop.f32.mrb[4].mxu0 }
 0x35a   :  { %v1426_v56 = vadd.f32 %v1819_v32, %v1718_v36  ;;  %v1417_v33 = vpop.f32.mrb[5].mxu0 }
 0x35b   :  { %v1418_v2 = vadd.f32 %v1718_v36, %v1417_v33  ;;  %v1820_v27 = vpop.f32.mrb[6].mxu0 }
 0x35c   :  { %v1450_v4 = vmax.f32 %v1426_v56, 0.0  ;;  %v1429_v50 = vadd.f32 %v1820_v27, %v1718_v36  ;;  %v1420_v42 = vpop.f32.mrb[7].mxu0 }
 0x35d   :  { %v1448_v39 = vmax.f32 %v1418_v2, 0.0  ;;  %v1421_v18 = vadd.f32 %v1718_v36, %v1420_v42 }
 0x35e   :  { %v1468_v5 = vrot.slane %v1450_v4, 4  ;;  %v1451_v37 = vmax.f32 %v1429_v50, 0.0 }
 0x35f   :  { %v1456_v20 = vrot.slane %v1448_v39, 4  ;;  %v1449_v53 = vmax.f32 %v1421_v18, 0.0 }
 0x360   :  { %v1469_v26 = vadd.f32 %v1468_v5, %v1450_v4  ;;  %v1474_v19 = vrot.slane %v1451_v37, 4 }
 0x361   :  { %v1457_v25 = vadd.f32 %v1456_v20, %v1448_v39  ;;  %v1462_v62 = vrot.slane %v1449_v53, 4  ;;  %v1823_v0 = vpop.f32.mrb[8].mxu0 }
 0x362   :  { %v1470_v29 = vrot.slane %v1469_v26, 2  ;;  %v1475_v6 = vadd.f32 %v1474_v19, %v1451_v37  ;;  %v1442_v35 = vadd.f32 %v1823_v0, %v1718_v36  ;;  %v1433_v10 = vpop.f32.mrb[9].mxu0 }
 0x363   :  { %v1458_v61 = vrot.slane %v1457_v25, 2  ;;  %v1463_v8 = vadd.f32 %v1462_v62, %v1449_v53  ;;  %v1434_v12 = vadd.f32 %v1718_v36, %v1433_v10  ;;  %v1824_v46 = vpop.f32.mrb[10].mxu0 }
 0x364   :  { %v1471_v63 = vadd.f32 %v1470_v29, %v1469_v26  ;;  %v1476_v38 = vrot.slane %v1475_v6, 2  ;;  %v1454_v34 = vmax.f32 %v1442_v35, 0.0  ;;  %v1445_v55 = vadd.f32 %v1824_v46, %v1718_v36  ;;  %v1436_v40 = vpop.f32.mrb[11].mxu0 }
 0x365   :  { %v1459_v58 = vadd.f32 %v1458_v61, %v1457_v25  ;;  %v1464_v44 = vrot.slane %v1463_v8, 2  ;;  %v1452_v22 = vmax.f32 %v1434_v12, 0.0  ;;  %v1437_v16 = vadd.f32 %v1718_v36, %v1436_v40 }
 0x366   :  { %v1472_v31 = vrot.slane %v1471_v63, 1  ;;  %v1477_v21 = vadd.f32 %v1476_v38, %v1475_v6  ;;  %v1492_v14 = vrot.slane %v1454_v34, 4  ;;  %v1455_v54 = vmax.f32 %v1445_v55, 0.0 }
 0x367   :  { %v1460_v60 = vrot.slane %v1459_v58, 1  ;;  %v1465_v15 = vadd.f32 %v1464_v44, %v1463_v8  ;;  %v1480_v13 = vrot.slane %v1452_v22, 4  ;;  %v1453_v28 = vmax.f32 %v1437_v16, 0.0 }
 0x368   :  { %v1473_v1 = vadd.f32 %v1472_v31, %v1471_v63  ;;  %v1478_v9 = vrot.slane %v1477_v21, 1  ;;  %v1493_v43 = vadd.f32 %v1492_v14, %v1454_v34  ;;  %v1498_v45 = vrot.slane %v1455_v54, 4 }
 0x369   :  { %v1461_v59 = vadd.f32 %v1460_v60, %v1459_v58  ;;  %v1466_v23 = vrot.slane %v1465_v15, 1  ;;  %v1481_v52 = vadd.f32 %v1480_v13, %v1452_v22  ;;  %v1486_v47 = vrot.slane %v1453_v28, 4  ;;  %v1727_v58 = vld [vmem:[%s3197_s10] ss:$0 sm:$0xff] }
 0x36a   :  { %v1479_v3 = vadd.f32 %v1478_v9, %v1477_v21  ;;  %v1494_v48 = vrot.slane %v1493_v43, 2  ;;  %v1499_v17 = vadd.f32 %v1498_v45, %v1455_v54  ;;  %v1506_v51 = vpack.c.bf16 %v1473_v1, %v1473_v1 }
 0x36b   :  { %v1504_v57 = vpack.c.bf16 %v1461_v59, %v1461_v59  ;;  %v1467_v49 = vadd.f32 %v1466_v23, %v1465_v15  ;;  %v1482_v41 = vrot.slane %v1481_v52, 2  ;;  %v1487_v7 = vadd.f32 %v1486_v47, %v1453_v28 }
 0x36c   :  { %v1495_v24 = vadd.f32 %v1494_v48, %v1493_v43  ;;  %v1500_v11 = vrot.slane %v1499_v17, 2  ;;  %v1507_v30 = vpack.c.bf16 %v1479_v3, %v1479_v3  ;;  %v1545_v39 = vunpack.c.l.b16 %v1506_v51 }
 0x36d   :  { %v1505_v36 = vpack.c.bf16 %v1467_v49, %v1467_v49  ;;  %v1483_v32 = vadd.f32 %v1482_v41, %v1481_v52  ;;  %v1488_v56 = vrot.slane %v1487_v7, 2  ;;  %v1543_v27 = vunpack.c.l.b16 %v1504_v57 }
 0x36e   :  { %v1496_v33 = vrot.slane %v1495_v24, 1  ;;  %v1501_v2 = vadd.f32 %v1500_v11, %v1499_v17  ;;  %v1546_v37 = vunpack.c.l.b16 %v1507_v30 }
 0x36f   :  { %v1544_v4 = vunpack.c.l.b16 %v1505_v36  ;;  %v1484_v50 = vrot.slane %v1483_v32, 1  ;;  %v1489_v42 = vadd.f32 %v1488_v56, %v1487_v7 }
 0x370   :  { %v1497_v18 = vadd.f32 %v1496_v33, %v1495_v24  ;;  %v1502_v5 = vrot.slane %v1501_v2, 1 }
 0x371   :  { %v1552_v20 = vsel %vm1551_vm10, %v1544_v4, %v1543_v27  ;;  %v1485_v53 = vadd.f32 %v1484_v50, %v1483_v32  ;;  %v1490_v26 = vrot.slane %v1489_v42, 1 }
 0x372   :  { %v1554_v19 = vsel %vm1553_vm4, %v1545_v39, %v1552_v20  ;;  %v1503_v25 = vadd.f32 %v1502_v5, %v1501_v2  ;;  %v1510_v6 = vpack.c.bf16 %v1497_v18, %v1497_v18 }
 0x373   :  { %v1508_v62 = vpack.c.bf16 %v1485_v53, %v1485_v53  ;;  %v1556_v0 = vsel %vm1555_vm9, %v1546_v37, %v1554_v19  ;;  %v1491_v29 = vadd.f32 %v1490_v26, %v1489_v42 }
 0x374   :  { %v1511_v10 = vpack.c.bf16 %v1503_v25, %v1503_v25  ;;  %v1549_v46 = vunpack.c.l.b16 %v1510_v6 }
 0x375   :  { %v1547_v35 = vunpack.c.l.b16 %v1508_v62  ;;  %v1509_v61 = vpack.c.bf16 %v1491_v29, %v1491_v29 }
 0x376   :  { %v1550_v63 = vunpack.c.l.b16 %v1511_v10 }
 0x377   :  { %v1558_v8 = vsel %vm1557_vm2, %v1547_v35, %v1556_v0  ;;  %v1548_v12 = vunpack.c.l.b16 %v1509_v61 }
 0x379   :  { %v1560_v38 = vsel %vm1559_vm7, %v1548_v12, %v1558_v8 }
 0x37a   :  { %v1562_v34 = vsel %vm1561_vm11, %v1549_v46, %v1560_v38 }
 0x37b   :  { %v1564_v55 = vsel %vm1563_vm13, %v1550_v63, %v1562_v34 }
 0x37c   :  { %v1565_v40 = vpack.c.b16 %v1564_v55, %v1564_v55 }
 0x37e   :  { %1842 = vmatmul.mubr.bf16.vlgmr.msra.gmra.mrb[8].mxu1 %v1565_v40 }
 0x451   :  { %v1649_v44 = vpop.f32.mrb[8].mxu1 }
 0x452   :  { %v1650_v22 = vadd.f32 %v1727_v58, %v1649_v44  ;;  %v1843_v16 = vpop.f32.mrb[9].mxu1 }
 0x453   :  { %v1652_v31 = vpop.f32.mrb[10].mxu1 }
 0x454   :  { %1655 = vst [vmem:[#allocation11] sm:$0xff] %v1650_v22  ;;  %v1844_v21 = vpop.f32.mrb[11].mxu1 }
 0x455   :  { %2072 = shalt.err (!%p2069_p2)
}
 0x456   :  { %s2073_s10 = scalar_lea.hbm %s3198_s11, 128 }
 0x457   :  { %p2074_p3 = scmp.ne.s32.totalorder %s3198_s11, %s2073_s10  ;;  %p2077_p4 = scmp.lt.u32.totalorder %s2073_s10, %s3198_s11 }
 0x459   :  { %p2079_p5 = pnand %p2077_p4, %p2074_p3 }
 0x45b   :  { %2082 = shalt.err (!%p2079_p5)
}
 0x45c   :  { %1665 = dma.vmem_to_hbm [thread:$0]  %s1663_s25, 128, %s3198_s11, [#allocation4]  }
 0x45d   :  { %2089 = dma.done.wait [#allocation4], 128  }
 0x45e   :  { %2090 = vsyncadd [#allocation4], 4294967168 }
 0x45f   :  { %1669 = vsyncpa [#allocation3], 1 }
 0x460   :  { %1670 = vsyncpa [#allocation6], 1 }
 0x461   :  { %1671 = vsyncpa [#allocation9], 1 }
 0x462   :  { %1672 = vsyncpa [#allocation4], 1 }

</bundles_post_ra>
